<compile_context>
chip_gen: v6e
topology: v6e:2x2x1
jax: 0.10.0
libtpu: 0.0.40
codegen_flags: <defaults>
</compile_context>

<pallas_src>
import numpy as np
import jax
import jax.numpy as jnp
from jax.experimental import pallas as pl
from jax.experimental.pallas import tpu as pltpu

GEN_DROPOUT = 0.05      # identity in eval-mode forward
LEAKY_SLOPE = 0.2
BN_EPS = 1e-5


def _leaky_relu(x):
    return jnp.where(x > 0, x, LEAKY_SLOPE * x)


def _round_up(v, m):
    return (v + m - 1) // m * m


def _pick_batch_block(N, L, bytes_per_lane, vmem_budget):
    """Largest B_blk s.t. N % B_blk == 0, the lane width B_blk*L is a multiple of
    128, the tile working set fits the VMEM budget, preferring an even grid
    G = N // B_blk >= 2 (megacore / v7x two-TensorCore sharding)."""
    def fits(bb):
        return N % bb == 0 and (bb * L) * bytes_per_lane <= vmem_budget
    lane_dense = [bb for bb in range(1, N + 1) if fits(bb) and (bb * L) % 128 == 0]
    for pred in (lambda g: g >= 2 and g % 2 == 0,   # even grid >= 2 (best)
                 lambda g: g >= 2,                   # any grid >= 2
                 lambda g: True):                    # last resort (G == 1)
        sel = [bb for bb in lane_dense if pred(N // bb)]
        if sel:
            return max(sel)
    # No lane-dense tiling possible (N*L too small): largest fitting batch block.
    any_fit = [bb for bb in range(1, N + 1) if fits(bb)]
    return max(any_fit) if any_fit else 1


def make_tcn_kernel(n_convs, dilations, has_out_conv, L, CH, W):
    """Kernel body over one lane-dense (CH, W) activation tile.

    Per layer (dilated conv k=3, BN folded host-side) uses shift-after-matmul:
        u = [W0; W1; W2] @ y                       (one MXU matmul)
        z[:, t] = u0[:, t-d]*(t>=d) + u1[:, t] + u2[:, t+d]*(t<L-d) + b
    with shifts on the XLU (pltpu.roll) and boundary masks on the VPU.
    """
    R3 = 3 * CH

    def kernel(x_ref, w_ref, b_ref, o_ref):
        # Activations are DMA'd in a narrow dtype; all compute/accumulation is f32.
        y = x_ref[...].astype(jnp.float32)                          # (CH, W)

        # Lane position within a sample (lanes ordered [b0:t0..L-1 | b1:... | ...]).
        # Computed once; per-dilation boundary masks hoisted out of the layer loop.
        t = jax.lax.broadcasted_iota(jnp.int32, (1, W), 1)
        t = (t & (L - 1)) if (L & (L - 1)) == 0 else (t % L)
        masks = [(t >= d, t < (L - d)) for d in dilations]

        ret = None
        for i in range(n_convs):
            d = dilations[i]
            if i > 0:
                y = _leaky_relu(y)

            w_i = w_ref[i]                                          # (R, CH) f32, resident
            b_i = b_ref[i]                                          # (CHB, 1)

            if i == 0 and has_out_conv:
                # 1x1 residual conv folded into layer 0's stacked matmul (rows R3:R3+CH).
                u = jnp.dot(w_i, y, preferred_element_type=jnp.float32)            # (R, W)
                ret = u[R3:R3 + CH, :] + b_i[CH:2 * CH, :]
            else:
                u = jnp.dot(w_i[0:R3, :], y, preferred_element_type=jnp.float32)   # (3CH, W)
                if i == 0:
                    ret = y                                         # residual path == x

            m_lo, m_hi = masks[i]
            z = (jnp.where(m_lo, pltpu.roll(u[0:CH, :], d % W, axis=1), 0.0)         # y[t-d] tap
                 + u[CH:2 * CH, :]                                                   # y[t]   tap
                 + jnp.where(m_hi, pltpu.roll(u[2 * CH:R3, :], (W - d) % W, axis=1), 0.0)  # y[t+d]
                 + b_i[0:CH, :])
            y = z                                                   # dropout == identity (eval)
            ret = ret + y

        o_ref[...] = _leaky_relu(ret).astype(o_ref.dtype)

    return kernel


def tcn_block_transpose(x, params, receptive_field_size, act_dtype=jnp.bfloat16):
    """Eval-mode forward of TCNBlockTranspose as a single Pallas TPU kernel."""
    N, C_in, L = x.shape
    n_convs = int(np.log2(receptive_field_size)) + 1
    dilations = [2 ** (n_convs - 1 - i) for i in range(n_convs)]
    OC = params["convs"][0]["w"].shape[0]
    has_out_conv = "out_conv" in params

    # Pad channels so the narrow activation tile (bf16 -> (16,128)) and all f32
    # sublane slices ((8,128)) are aligned.
    sub = 16 if jnp.dtype(act_dtype).itemsize == 2 else 8
    CH = _round_up(max(C_in, OC), sub)
    R3 = 3 * CH
    R = R3 + (CH if has_out_conv else 0)
    CHB = 2 * CH if has_out_conv else CH

    # ---- VMEM budget -> lane-dense tile width & grid (v7x has only 64 MiB/TC) ----
    try:
        vmem_cap = int(pltpu.get_tpu_info().vmem_capacity_bytes)
    except Exception:
        vmem_cap = 64 * 1024 * 1024                    # conservative (v7x per-TC VMEM)
    act_bytes = jnp.dtype(act_dtype).itemsize
    # Per lane: double-buffered input (act dtype) + double-buffered f32 output
    # + ~12 live f32 (CH, W) temporaries (y / u / z / ret / rolled taps).
    bytes_per_lane = CH * (2 * act_bytes + 2 * 4 + 12 * 4)
    tile_budget = int(0.6 * vmem_cap)
    vmem_limit = max(32 << 20, min(int(0.9 * vmem_cap), 128 << 20))

    x_pad = jnp.pad(x, ((0, 0), (0, CH - C_in), (0, 0))).astype(act_dtype)
    if L % 128 == 0 and L * bytes_per_lane <= tile_budget:
        # Per-sample rows are already lane-dense: keep batch as the grid axis and
        # skip the host-side pack/unpack transposes (extra HBM round trips).
        B_blk, G, W, packed = 1, N, L, False
        x_p = x_pad
    else:
        B_blk = _pick_batch_block(N, L, bytes_per_lane, tile_budget)
        G, W, packed = N // B_blk, B_blk * L, True
        # Fold the batch into the lane axis: lanes ordered [batch, time] per tile.
        x_p = x_pad.reshape(G, B_blk, CH, L).transpose(0, 2, 1, 3).reshape(G, CH, W)

    # ---- host-side glue: fold eval-mode BN into the conv, stack the 3 taps (plus
    #      the 1x1 residual conv for layer 0) along the output-row axis, pad, pack ----
    w_rows, b_rows = [], []
    for i in range(n_convs):
        cw = params["convs"][i]["w"].astype(jnp.float32)            # (OC, IC, 3)
        cb = params["convs"][i]["b"].astype(jnp.float32)            # (OC,)
        bn = params["bns"][i]
        scale = bn["gamma"] / jnp.sqrt(bn["var"] + BN_EPS)
        w_eff = cw * scale[:, None, None]                            # BN folded into W
        b_eff = scale * (cb - bn["mean"]) + bn["beta"]               # BN folded into b
        ic = cw.shape[1]
        wt = jnp.transpose(w_eff, (2, 0, 1))                         # (3, OC, IC): tap-major
        wt = jnp.pad(wt, ((0, 0), (0, CH - OC), (0, CH - ic)))       # (3, CH, CH)
        wt = wt.reshape(R3, CH)
        bias = jnp.pad(b_eff, (0, CH - OC))
        if has_out_conv:
            wo = jnp.zeros((CH, CH), jnp.float32)
            bo = jnp.zeros((CH,), jnp.float32)
            if i == 0:
                wo = jnp.pad(params["out_conv"]["w"][:, :, 0].astype(jnp.float32),
                             ((0, CH - OC), (0, CH - C_in)))
                bo = jnp.pad(params["out_conv"]["b"].astype(jnp.float32), (0, CH - OC))
            wt = jnp.concatenate([wt, wo], axis=0)                   # (R, CH)
            bias = jnp.concatenate([bias, bo], axis=0)               # (2*CH,)
        w_rows.append(wt)
        b_rows.append(bias.reshape(CHB, 1))
    w_slab = jnp.stack(w_rows, axis=0)                               # (n_convs, R, CH)
    b_slab = jnp.stack(b_rows, axis=0)                               # (n_convs, CHB, 1)

    kernel = make_tcn_kernel(n_convs, dilations, has_out_conv, L, CH, W)
    out = pl.pallas_call(
        kernel,
        out_shape=jax.ShapeDtypeStruct((G, CH, W), x.dtype),
        grid=(G,),
        in_specs=[
            pl.BlockSpec((None, CH, W), lambda g: (g, 0, 0)),
            pl.BlockSpec((n_convs, R, CH), lambda g: (0, 0, 0)),    # resident weights
            pl.BlockSpec((n_convs, CHB, 1), lambda g: (0, 0, 0)),   # resident biases
        ],
        out_specs=pl.BlockSpec((None, CH, W), lambda g: (g, 0, 0)),
        compiler_params=pltpu.CompilerParams(
            dimension_semantics=("parallel",),        # megacore / v7x 2-TC sharding
            vmem_limit_bytes=vmem_limit),
    )(x_p, w_slab, b_slab)

    if packed:
        out = out.reshape(G, CH, B_blk, L).transpose(0, 2, 1, 3).reshape(N, CH, L)
    return out[:, :OC, :]


def ref_forward(x, params, receptive_field_size):
    """Pure-JAX reference mirroring the PyTorch forward (eval mode)."""
    n_convs = int(np.log2(receptive_field_size)) + 1
    dilations = [2 ** (n_convs - 1 - i) for i in range(n_convs)]
    N, _, L = x.shape
    y = x
    outs = []
    for i in range(n_convs):
        if i > 0:
            y = _leaky_relu(y)
        d = dilations[i]
        cw, cb = params["convs"][i]["w"], params["convs"][i]["b"]
        ypad = jnp.pad(y, ((0, 0), (0, 0), (d, d)))
        acc = cb[None, :, None]
        for k in range(3):
            tap = ypad[:, :, k * d:k * d + L]
            acc = acc + jnp.einsum('oi,nil->nol', cw[:, :, k], tap)
        bn = params["bns"][i]
        z = (acc - bn["mean"][None, :, None]) / jnp.sqrt(bn["var"][None, :, None] + BN_EPS)
        z = z * bn["gamma"][None, :, None] + bn["beta"][None, :, None]
        y = z
        outs.append(y)
    if "out_conv" in params:
        wo, bo = params["out_conv"]["w"], params["out_conv"]["b"]
        x = jnp.einsum('oi,nil->nol', wo[:, :, 0], x) + bo[None, :, None]
    ret = x
    for o in outs:
        ret = ret + o
    return _leaky_relu(ret)


def init_params(key, in_channels, out_channels, receptive_field_size):
    """Deterministic synthetic parameters matching the module's __init__ shapes."""
    n_convs = int(np.log2(receptive_field_size)) + 1
    params = {"convs": [], "bns": []}
    for i in range(n_convs):
        ic = in_channels if i == 0 else out_channels
        key, k1, k2, k3, k4, k5, k6 = jax.random.split(key, 7)
        params["convs"].append({
            "w": 0.2 * jax.random.normal(k1, (out_channels, ic, 3), jnp.float32),
            "b": 0.1 * jax.random.normal(k2, (out_channels,), jnp.float32),
        })
        params["bns"].append({
            "gamma": 1.0 + 0.1 * jax.random.normal(k3, (out_channels,), jnp.float32),
            "beta": 0.1 * jax.random.normal(k4, (out_channels,), jnp.float32),
            "mean": 0.1 * jax.random.normal(k5, (out_channels,), jnp.float32),
            "var": 0.8 + 0.4 * jax.random.uniform(k6, (out_channels,), jnp.float32),
        })
    if in_channels != out_channels:
        key, k1, k2 = jax.random.split(key, 3)
        params["out_conv"] = {
            "w": 0.2 * jax.random.normal(k1, (out_channels, in_channels, 1), jnp.float32),
            "b": 0.1 * jax.random.normal(k2, (out_channels,), jnp.float32),
        }
    return params


if __name__ == "__main__":
    # n_convs = log2(8)+1 = 4 (dilations 8,4,2,1). _pick_batch_block folds 8 samples
    # per tile -> lane-dense (16, 512) activation tiles, grid G=2 (even, so both
    # v7x TensorCores get work).
    N, C_IN, C_OUT, L, RFS = 16, 4, 8, 64, 8
    key = jax.random.PRNGKey(0)
    kx, kp = jax.random.split(key)
    x = jax.random.normal(kx, (N, C_IN, L), jnp.float32)
    params = init_params(kp, C_IN, C_OUT, RFS)

    out = tcn_block_transpose(x, params, RFS)
    out = jax.block_until_ready(out)

    ref = ref_forward(x, params, RFS)
    # Activations are DMA'd as bf16 (f32 accumulation in-kernel), so allow
    # bf16-input-quantization-level error vs. the pure-f32 reference.
    np.testing.assert_allclose(np.asarray(out), np.asarray(ref), rtol=2e-2, atol=2e-2)

    print("KERNEL_OK")
</pallas_src>

<mosaic_0001>
module attributes {stable_mosaic.version = 11 : i64} {
  func.func @kernel(%arg0: i32, %arg1: memref<1x16x512xbf16, #tpu.memory_space<vmem>>, %arg2: memref<4x64x16xf32, #tpu.memory_space<vmem>>, %arg3: memref<4x32x1xf32, #tpu.memory_space<vmem>>, %arg4: memref<1x16x512xf32, #tpu.memory_space<vmem>>) attributes {dimension_semantics = [#tpu.dimension_semantics<parallel>], iteration_bounds = array<i64: 2>, scalar_prefetch = 0 : i64, scratch_operands = 0 : i64, tpu.core_type = #tpu.core_type<tc>, window_params = [{transform_indices = @transform_0, window_bounds = array<i64: 1, 16, 512>}, {pipeline_mode = #tpu.pipeline_mode<synchronous>, transform_indices = @transform_1, window_bounds = array<i64: 4, 64, 16>}, {pipeline_mode = #tpu.pipeline_mode<synchronous>, transform_indices = @transform_2, window_bounds = array<i64: 4, 32, 1>}, {transform_indices = @transform_3, window_bounds = array<i64: 1, 16, 512>}]} {
    %c0 = arith.constant 0 : index
    %c0_0 = arith.constant 0 : index
    %c0_1 = arith.constant 0 : index
    %0 = vector.load %arg1[%c0, %c0_0, %c0_1] : memref<1x16x512xbf16, #tpu.memory_space<vmem>>, vector<1x16x512xbf16>
    %1 = vector.shape_cast %0 : vector<1x16x512xbf16> to vector<16x512xbf16>
    %2 = arith.extf %1 : vector<16x512xbf16> to vector<16x512xf32>
    %3 = tpu.iota {dimensions = array<i32: 1>} : vector<1x512xi32>
    %c63_i32 = arith.constant 63 : i32
    %4 = vector.broadcast %c63_i32 : i32 to vector<1x512xi32>
    %5 = arith.andi %3, %4 : vector<1x512xi32>
    %c8_i32 = arith.constant 8 : i32
    %6 = vector.broadcast %c8_i32 : i32 to vector<1x512xi32>
    %7 = arith.cmpi sge, %5, %6 : vector<1x512xi32>
    %c56_i32 = arith.constant 56 : i32
    %8 = vector.broadcast %c56_i32 : i32 to vector<1x512xi32>
    %9 = arith.cmpi slt, %5, %8 : vector<1x512xi32>
    %c4_i32 = arith.constant 4 : i32
    %10 = vector.broadcast %c4_i32 : i32 to vector<1x512xi32>
    %11 = arith.cmpi sge, %5, %10 : vector<1x512xi32>
    %c60_i32 = arith.constant 60 : i32
    %12 = vector.broadcast %c60_i32 : i32 to vector<1x512xi32>
    %13 = arith.cmpi slt, %5, %12 : vector<1x512xi32>
    %c2_i32 = arith.constant 2 : i32
    %14 = vector.broadcast %c2_i32 : i32 to vector<1x512xi32>
    %15 = arith.cmpi sge, %5, %14 : vector<1x512xi32>
    %c62_i32 = arith.constant 62 : i32
    %16 = vector.broadcast %c62_i32 : i32 to vector<1x512xi32>
    %17 = arith.cmpi slt, %5, %16 : vector<1x512xi32>
    %c1_i32 = arith.constant 1 : i32
    %18 = vector.broadcast %c1_i32 : i32 to vector<1x512xi32>
    %19 = arith.cmpi sge, %5, %18 : vector<1x512xi32>
    %c63_i32_2 = arith.constant 63 : i32
    %20 = vector.broadcast %c63_i32_2 : i32 to vector<1x512xi32>
    %21 = arith.cmpi slt, %5, %20 : vector<1x512xi32>
    %c0_3 = arith.constant 0 : index
    %c0_4 = arith.constant 0 : index
    %c0_5 = arith.constant 0 : index
    %22 = vector.load %arg2[%c0_3, %c0_4, %c0_5] : memref<4x64x16xf32, #tpu.memory_space<vmem>>, vector<1x64x16xf32>
    %23 = vector.shape_cast %22 : vector<1x64x16xf32> to vector<64x16xf32>
    %c0_6 = arith.constant 0 : index
    %c0_7 = arith.constant 0 : index
    %c0_8 = arith.constant 0 : index
    %24 = vector.load %arg3[%c0_6, %c0_7, %c0_8] : memref<4x32x1xf32, #tpu.memory_space<vmem>>, vector<1x32x1xf32>
    %25 = vector.shape_cast %24 : vector<1x32x1xf32> to vector<32x1xf32>
    %cst = arith.constant dense<0.000000e+00> : vector<64x512xf32>
    %26 = tpu.matmul %23, %2, %cst {dimension_numbers = #tpu.dot_dimension_numbers<[1], [0], [0], [1], [0, 0, 1, 1], [], []>} : vector<64x16xf32>, vector<16x512xf32>, vector<64x512xf32> -> vector<64x512xf32>
    %27 = vector.extract_strided_slice %26 {offsets = [48, 0], sizes = [16, 512], strides = [1, 1]} : vector<64x512xf32> to vector<16x512xf32>
    %28 = vector.extract_strided_slice %25 {offsets = [16, 0], sizes = [16, 1], strides = [1, 1]} : vector<32x1xf32> to vector<16x1xf32>
    %29 = vector.broadcast %28 : vector<16x1xf32> to vector<16x512xf32>
    %30 = arith.addf %27, %29 : vector<16x512xf32>
    %31 = vector.extract_strided_slice %26 {offsets = [0, 0], sizes = [16, 512], strides = [1, 1]} : vector<64x512xf32> to vector<16x512xf32>
    %c8_i32_9 = arith.constant 8 : i32
    %32 = tpu.dynamic_rotate %31 by %c8_i32_9 dim 1 : vector<16x512xf32>, i32 -> vector<16x512xf32>
    %cst_10 = arith.constant 0.000000e+00 : f32
    %33 = vector.shape_cast %7 : vector<1x512xi1> to vector<1x512xi1>
    %34 = vector.broadcast %33 : vector<1x512xi1> to vector<16x512xi1>
    %35 = vector.broadcast %cst_10 : f32 to vector<16x512xf32>
    %36 = arith.select %34, %32, %35 : vector<16x512xi1>, vector<16x512xf32>
    %37 = vector.extract_strided_slice %26 {offsets = [16, 0], sizes = [16, 512], strides = [1, 1]} : vector<64x512xf32> to vector<16x512xf32>
    %38 = arith.addf %36, %37 : vector<16x512xf32>
    %39 = vector.extract_strided_slice %26 {offsets = [32, 0], sizes = [16, 512], strides = [1, 1]} : vector<64x512xf32> to vector<16x512xf32>
    %c504_i32 = arith.constant 504 : i32
    %40 = tpu.dynamic_rotate %39 by %c504_i32 dim 1 : vector<16x512xf32>, i32 -> vector<16x512xf32>
    %cst_11 = arith.constant 0.000000e+00 : f32
    %41 = vector.shape_cast %9 : vector<1x512xi1> to vector<1x512xi1>
    %42 = vector.broadcast %41 : vector<1x512xi1> to vector<16x512xi1>
    %43 = vector.broadcast %cst_11 : f32 to vector<16x512xf32>
    %44 = arith.select %42, %40, %43 : vector<16x512xi1>, vector<16x512xf32>
    %45 = arith.addf %38, %44 : vector<16x512xf32>
    %46 = vector.extract_strided_slice %25 {offsets = [0, 0], sizes = [16, 1], strides = [1, 1]} : vector<32x1xf32> to vector<16x1xf32>
    %47 = vector.broadcast %46 : vector<16x1xf32> to vector<16x512xf32>
    %48 = arith.addf %45, %47 : vector<16x512xf32>
    %49 = arith.addf %30, %48 : vector<16x512xf32>
    %cst_12 = arith.constant 0.000000e+00 : f32
    %50 = vector.broadcast %cst_12 : f32 to vector<16x512xf32>
    %51 = arith.cmpf ogt, %48, %50 : vector<16x512xf32>
    %cst_13 = arith.constant 2.000000e-01 : f32
    %52 = vector.broadcast %cst_13 : f32 to vector<16x512xf32>
    %53 = arith.mulf %52, %48 : vector<16x512xf32>
    %54 = arith.select %51, %48, %53 : vector<16x512xi1>, vector<16x512xf32>
    %c1 = arith.constant 1 : index
    %c0_14 = arith.constant 0 : index
    %c0_15 = arith.constant 0 : index
    %55 = vector.load %arg2[%c1, %c0_14, %c0_15] : memref<4x64x16xf32, #tpu.memory_space<vmem>>, vector<1x64x16xf32>
    %56 = vector.shape_cast %55 : vector<1x64x16xf32> to vector<64x16xf32>
    %c1_16 = arith.constant 1 : index
    %c0_17 = arith.constant 0 : index
    %c0_18 = arith.constant 0 : index
    %57 = vector.load %arg3[%c1_16, %c0_17, %c0_18] : memref<4x32x1xf32, #tpu.memory_space<vmem>>, vector<1x32x1xf32>
    %58 = vector.shape_cast %57 : vector<1x32x1xf32> to vector<32x1xf32>
    %59 = vector.extract_strided_slice %56 {offsets = [0, 0], sizes = [48, 16], strides = [1, 1]} : vector<64x16xf32> to vector<48x16xf32>
    %cst_19 = arith.constant dense<0.000000e+00> : vector<48x512xf32>
    %60 = tpu.matmul %59, %54, %cst_19 {dimension_numbers = #tpu.dot_dimension_numbers<[1], [0], [0], [1], [0, 0, 1, 1], [], []>} : vector<48x16xf32>, vector<16x512xf32>, vector<48x512xf32> -> vector<48x512xf32>
    %61 = vector.extract_strided_slice %60 {offsets = [0, 0], sizes = [16, 512], strides = [1, 1]} : vector<48x512xf32> to vector<16x512xf32>
    %c4_i32_20 = arith.constant 4 : i32
    %62 = tpu.dynamic_rotate %61 by %c4_i32_20 dim 1 : vector<16x512xf32>, i32 -> vector<16x512xf32>
    %cst_21 = arith.constant 0.000000e+00 : f32
    %63 = vector.shape_cast %11 : vector<1x512xi1> to vector<1x512xi1>
    %64 = vector.broadcast %63 : vector<1x512xi1> to vector<16x512xi1>
    %65 = vector.broadcast %cst_21 : f32 to vector<16x512xf32>
    %66 = arith.select %64, %62, %65 : vector<16x512xi1>, vector<16x512xf32>
    %67 = vector.extract_strided_slice %60 {offsets = [16, 0], sizes = [16, 512], strides = [1, 1]} : vector<48x512xf32> to vector<16x512xf32>
    %68 = arith.addf %66, %67 : vector<16x512xf32>
    %69 = vector.extract_strided_slice %60 {offsets = [32, 0], sizes = [16, 512], strides = [1, 1]} : vector<48x512xf32> to vector<16x512xf32>
    %c508_i32 = arith.constant 508 : i32
    %70 = tpu.dynamic_rotate %69 by %c508_i32 dim 1 : vector<16x512xf32>, i32 -> vector<16x512xf32>
    %cst_22 = arith.constant 0.000000e+00 : f32
    %71 = vector.shape_cast %13 : vector<1x512xi1> to vector<1x512xi1>
    %72 = vector.broadcast %71 : vector<1x512xi1> to vector<16x512xi1>
    %73 = vector.broadcast %cst_22 : f32 to vector<16x512xf32>
    %74 = arith.select %72, %70, %73 : vector<16x512xi1>, vector<16x512xf32>
    %75 = arith.addf %68, %74 : vector<16x512xf32>
    %76 = vector.extract_strided_slice %58 {offsets = [0, 0], sizes = [16, 1], strides = [1, 1]} : vector<32x1xf32> to vector<16x1xf32>
    %77 = vector.broadcast %76 : vector<16x1xf32> to vector<16x512xf32>
    %78 = arith.addf %75, %77 : vector<16x512xf32>
    %79 = arith.addf %49, %78 : vector<16x512xf32>
    %cst_23 = arith.constant 0.000000e+00 : f32
    %80 = vector.broadcast %cst_23 : f32 to vector<16x512xf32>
    %81 = arith.cmpf ogt, %78, %80 : vector<16x512xf32>
    %cst_24 = arith.constant 2.000000e-01 : f32
    %82 = vector.broadcast %cst_24 : f32 to vector<16x512xf32>
    %83 = arith.mulf %82, %78 : vector<16x512xf32>
    %84 = arith.select %81, %78, %83 : vector<16x512xi1>, vector<16x512xf32>
    %c2 = arith.constant 2 : index
    %c0_25 = arith.constant 0 : index
    %c0_26 = arith.constant 0 : index
    %85 = vector.load %arg2[%c2, %c0_25, %c0_26] : memref<4x64x16xf32, #tpu.memory_space<vmem>>, vector<1x64x16xf32>
    %86 = vector.shape_cast %85 : vector<1x64x16xf32> to vector<64x16xf32>
    %c2_27 = arith.constant 2 : index
    %c0_28 = arith.constant 0 : index
    %c0_29 = arith.constant 0 : index
    %87 = vector.load %arg3[%c2_27, %c0_28, %c0_29] : memref<4x32x1xf32, #tpu.memory_space<vmem>>, vector<1x32x1xf32>
    %88 = vector.shape_cast %87 : vector<1x32x1xf32> to vector<32x1xf32>
    %89 = vector.extract_strided_slice %86 {offsets = [0, 0], sizes = [48, 16], strides = [1, 1]} : vector<64x16xf32> to vector<48x16xf32>
    %cst_30 = arith.constant dense<0.000000e+00> : vector<48x512xf32>
    %90 = tpu.matmul %89, %84, %cst_30 {dimension_numbers = #tpu.dot_dimension_numbers<[1], [0], [0], [1], [0, 0, 1, 1], [], []>} : vector<48x16xf32>, vector<16x512xf32>, vector<48x512xf32> -> vector<48x512xf32>
    %91 = vector.extract_strided_slice %90 {offsets = [0, 0], sizes = [16, 512], strides = [1, 1]} : vector<48x512xf32> to vector<16x512xf32>
    %c2_i32_31 = arith.constant 2 : i32
    %92 = tpu.dynamic_rotate %91 by %c2_i32_31 dim 1 : vector<16x512xf32>, i32 -> vector<16x512xf32>
    %cst_32 = arith.constant 0.000000e+00 : f32
    %93 = vector.shape_cast %15 : vector<1x512xi1> to vector<1x512xi1>
    %94 = vector.broadcast %93 : vector<1x512xi1> to vector<16x512xi1>
    %95 = vector.broadcast %cst_32 : f32 to vector<16x512xf32>
    %96 = arith.select %94, %92, %95 : vector<16x512xi1>, vector<16x512xf32>
    %97 = vector.extract_strided_slice %90 {offsets = [16, 0], sizes = [16, 512], strides = [1, 1]} : vector<48x512xf32> to vector<16x512xf32>
    %98 = arith.addf %96, %97 : vector<16x512xf32>
    %99 = vector.extract_strided_slice %90 {offsets = [32, 0], sizes = [16, 512], strides = [1, 1]} : vector<48x512xf32> to vector<16x512xf32>
    %c510_i32 = arith.constant 510 : i32
    %100 = tpu.dynamic_rotate %99 by %c510_i32 dim 1 : vector<16x512xf32>, i32 -> vector<16x512xf32>
    %cst_33 = arith.constant 0.000000e+00 : f32
    %101 = vector.shape_cast %17 : vector<1x512xi1> to vector<1x512xi1>
    %102 = vector.broadcast %101 : vector<1x512xi1> to vector<16x512xi1>
    %103 = vector.broadcast %cst_33 : f32 to vector<16x512xf32>
    %104 = arith.select %102, %100, %103 : vector<16x512xi1>, vector<16x512xf32>
    %105 = arith.addf %98, %104 : vector<16x512xf32>
    %106 = vector.extract_strided_slice %88 {offsets = [0, 0], sizes = [16, 1], strides = [1, 1]} : vector<32x1xf32> to vector<16x1xf32>
    %107 = vector.broadcast %106 : vector<16x1xf32> to vector<16x512xf32>
    %108 = arith.addf %105, %107 : vector<16x512xf32>
    %109 = arith.addf %79, %108 : vector<16x512xf32>
    %cst_34 = arith.constant 0.000000e+00 : f32
    %110 = vector.broadcast %cst_34 : f32 to vector<16x512xf32>
    %111 = arith.cmpf ogt, %108, %110 : vector<16x512xf32>
    %cst_35 = arith.constant 2.000000e-01 : f32
    %112 = vector.broadcast %cst_35 : f32 to vector<16x512xf32>
    %113 = arith.mulf %112, %108 : vector<16x512xf32>
    %114 = arith.select %111, %108, %113 : vector<16x512xi1>, vector<16x512xf32>
    %c3 = arith.constant 3 : index
    %c0_36 = arith.constant 0 : index
    %c0_37 = arith.constant 0 : index
    %115 = vector.load %arg2[%c3, %c0_36, %c0_37] : memref<4x64x16xf32, #tpu.memory_space<vmem>>, vector<1x64x16xf32>
    %116 = vector.shape_cast %115 : vector<1x64x16xf32> to vector<64x16xf32>
    %c3_38 = arith.constant 3 : index
    %c0_39 = arith.constant 0 : index
    %c0_40 = arith.constant 0 : index
    %117 = vector.load %arg3[%c3_38, %c0_39, %c0_40] : memref<4x32x1xf32, #tpu.memory_space<vmem>>, vector<1x32x1xf32>
    %118 = vector.shape_cast %117 : vector<1x32x1xf32> to vector<32x1xf32>
    %119 = vector.extract_strided_slice %116 {offsets = [0, 0], sizes = [48, 16], strides = [1, 1]} : vector<64x16xf32> to vector<48x16xf32>
    %cst_41 = arith.constant dense<0.000000e+00> : vector<48x512xf32>
    %120 = tpu.matmul %119, %114, %cst_41 {dimension_numbers = #tpu.dot_dimension_numbers<[1], [0], [0], [1], [0, 0, 1, 1], [], []>} : vector<48x16xf32>, vector<16x512xf32>, vector<48x512xf32> -> vector<48x512xf32>
    %121 = vector.extract_strided_slice %120 {offsets = [0, 0], sizes = [16, 512], strides = [1, 1]} : vector<48x512xf32> to vector<16x512xf32>
    %c1_i32_42 = arith.constant 1 : i32
    %122 = tpu.dynamic_rotate %121 by %c1_i32_42 dim 1 : vector<16x512xf32>, i32 -> vector<16x512xf32>
    %cst_43 = arith.constant 0.000000e+00 : f32
    %123 = vector.shape_cast %19 : vector<1x512xi1> to vector<1x512xi1>
    %124 = vector.broadcast %123 : vector<1x512xi1> to vector<16x512xi1>
    %125 = vector.broadcast %cst_43 : f32 to vector<16x512xf32>
    %126 = arith.select %124, %122, %125 : vector<16x512xi1>, vector<16x512xf32>
    %127 = vector.extract_strided_slice %120 {offsets = [16, 0], sizes = [16, 512], strides = [1, 1]} : vector<48x512xf32> to vector<16x512xf32>
    %128 = arith.addf %126, %127 : vector<16x512xf32>
    %129 = vector.extract_strided_slice %120 {offsets = [32, 0], sizes = [16, 512], strides = [1, 1]} : vector<48x512xf32> to vector<16x512xf32>
    %c511_i32 = arith.constant 511 : i32
    %130 = tpu.dynamic_rotate %129 by %c511_i32 dim 1 : vector<16x512xf32>, i32 -> vector<16x512xf32>
    %cst_44 = arith.constant 0.000000e+00 : f32
    %131 = vector.shape_cast %21 : vector<1x512xi1> to vector<1x512xi1>
    %132 = vector.broadcast %131 : vector<1x512xi1> to vector<16x512xi1>
    %133 = vector.broadcast %cst_44 : f32 to vector<16x512xf32>
    %134 = arith.select %132, %130, %133 : vector<16x512xi1>, vector<16x512xf32>
    %135 = arith.addf %128, %134 : vector<16x512xf32>
    %136 = vector.extract_strided_slice %118 {offsets = [0, 0], sizes = [16, 1], strides = [1, 1]} : vector<32x1xf32> to vector<16x1xf32>
    %137 = vector.broadcast %136 : vector<16x1xf32> to vector<16x512xf32>
    %138 = arith.addf %135, %137 : vector<16x512xf32>
    %139 = arith.addf %109, %138 : vector<16x512xf32>
    %cst_45 = arith.constant 0.000000e+00 : f32
    %140 = vector.broadcast %cst_45 : f32 to vector<16x512xf32>
    %141 = arith.cmpf ogt, %139, %140 : vector<16x512xf32>
    %cst_46 = arith.constant 2.000000e-01 : f32
    %142 = vector.broadcast %cst_46 : f32 to vector<16x512xf32>
    %143 = arith.mulf %142, %139 : vector<16x512xf32>
    %144 = arith.select %141, %139, %143 : vector<16x512xi1>, vector<16x512xf32>
    %c0_47 = arith.constant 0 : index
    %c0_48 = arith.constant 0 : index
    %c0_49 = arith.constant 0 : index
    %145 = vector.load %arg4[%c0_47, %c0_48, %c0_49] : memref<1x16x512xf32, #tpu.memory_space<vmem>>, vector<1x16x512xf32>
    %146 = vector.shape_cast %145 : vector<1x16x512xf32> to vector<16x512xf32>
    %147 = vector.shape_cast %144 : vector<16x512xf32> to vector<1x16x512xf32>
    tpu.vector_store %arg4[%c0_47, %c0_48, %c0_49], %147 {strides = array<i32>} : memref<1x16x512xf32, #tpu.memory_space<vmem>>, vector<1x16x512xf32>,
    return
  }
  func.func @transform_0(%arg0: i32) -> (i32, i32, i32) {
    %c0_i32 = arith.constant 0 : i32
    %c0_i32_0 = arith.constant 0 : i32
    %c0_i32_1 = arith.constant 0 : i32
    return %arg0, %c0_i32, %c0_i32_0 : i32, i32, i32
  }
  func.func @transform_1(%arg0: i32) -> (i32, i32, i32) {
    %c0_i32 = arith.constant 0 : i32
    %c0_i32_0 = arith.constant 0 : i32
    %c0_i32_1 = arith.constant 0 : i32
    %c0_i32_2 = arith.constant 0 : i32
    return %c0_i32, %c0_i32_0, %c0_i32_1 : i32, i32, i32
  }
  func.func @transform_2(%arg0: i32) -> (i32, i32, i32) {
    %c0_i32 = arith.constant 0 : i32
    %c0_i32_0 = arith.constant 0 : i32
    %c0_i32_1 = arith.constant 0 : i32
    %c0_i32_2 = arith.constant 0 : i32
    return %c0_i32, %c0_i32_0, %c0_i32_1 : i32, i32, i32
  }
  func.func @transform_3(%arg0: i32) -> (i32, i32, i32) {
    %c0_i32 = arith.constant 0 : i32
    %c0_i32_0 = arith.constant 0 : i32
    %c0_i32_1 = arith.constant 0 : i32
    return %arg0, %c0_i32, %c0_i32_0 : i32, i32, i32
  }
}

</mosaic_0001>

<bundles_post_ra>
// kernel: tpu_custom_call.1
= control target key start
LH: loop header
LB: loop body
LE: loop exit
PB: predicated region body
PF: predicated region fallthrough
CT: control target
= control target key end

     0   :  { %8 = vsyncpa [#allocation3], 0  ;;  %s3079_s0 = inlined_call_operand.vmem [shape: bf16[2,16,512], index: 0, kind: input, shape index: {}]   ;;  %s3080_s1 = inlined_call_operand.vmem [shape: f32[4,64,16], index: 1, kind: input, shape index: {}]   ;;  %s3081_s2 = inlined_call_operand.vmem [shape: f32[4,32,1], index: 2, kind: input, shape index: {}]   ;;  %s3082_s3 = inlined_call_operand.hbm [shape: f32[2,16,512], index: 3, kind: output, shape index: {}]  }
   0x1   :  { %10 = vsyncpa [#allocation3 + $0x1], 0  ;;  %s2107_s12 = smov 0   ;;  %s2109_s13 = smov 0  }
   0x2   :  { %s2111_s14 = smov 0   ;;  %s2113_s15 = smov 0  }
   0x3 LB: > { %s2128_s16 = sadd.s32 4294967295, %s2072_s15   ;;  %s1869_s17 = sadd.s32 4294967294, %s2072_s15   ;;  %s2072_s15 = sphi %s2113_s15, %s3091_s15   ;;  %s2068_s14 = sphi %s2111_s14, %s3090_s14   ;;  %s2064_s13 = sphi %s2109_s13, %s3089_s13   ;;  %s2060_s12 = sphi %s2107_s12, %s3088_s12  }
   0x4   : > { %s2132_s18 = sadd.s32 1, %s2072_s15   ;;  %s91_s19 = sadd.s32 1, %s2068_s14 }
   0x5   : > { %s88_s20 = ssub.s32 %s2072_s15, %s2132_s18  ;;  %p101_p0 = scmp.ne.s32.totalorder %s2068_s14, %s2064_s13 }
   0x6   : > { %p89_p1 = scmp.eq.s32.totalorder %s88_s20, 0  ;;  %p102_p2 = scmp.eq.s32.totalorder %s2128_s16, 1 }
   0x7   : > { %p107_p3 = scmp.ne.s32.totalorder %s2064_s13, %s2060_s12  ;;  %p108_p4 = scmp.eq.s32.totalorder %s1869_s17, 1 }
   0x8   : > { %s2143_s21 = scalar_select %p89_p1, %s2068_s14, %s91_s19  }
   0x9   : > { %p2145_p5 = por %p102_p2, %p101_p0  ;;  %p2149_p6 = por %p108_p4, %p107_p3 }
   0xa   : > { %p1872_p7 = scmp.ge.s32.totalorder %s2072_s15, 1  ;;  %p140_p8 = scmp.lt.s32.totalorder %s2072_s15, 3 }
   0xc   : > { %p141_p9 = pnand %p1872_p7, %p140_p8 }
   0xe   : > { %144 = sbr.rel (%p141_p9) target bundleno = 1454 (0x5ae), region = 32 }
  0x13   : > { %p164_p10 = scmp.lt.s32.totalorder %s2128_s16, 1  ;;  %v2074_v0 = vmov 0.0   ;;  %v2075_v1 = vmov 0   ;;  %v231_v2 = vld [vmem:[%s3081_s2 + $0x8] sm:$0xff]  ;;  %v230_v3 = vld [vmem:[%s3081_s2] sm:$0xff]  ;;  %vm234_vm0 = vcmask 130048   ;;  %v181_v54 = vlaneseq }
  0x14   : > { %323 = vmatprep.mubr.f32.mxu0 %v2074_v0  ;;  %436 = vmatprep.mubr.f32.mxu1 %v2074_v0  ;;  %v222_v16 = vld [vmem:[%s3080_s1] sm:$0xff]  ;;  %v223_v17 = vld [vmem:[%s3080_s1 + $0x8] sm:$0xff]  ;;  %v224_v18 = vld [vmem:[%s3080_s1 + $0x10] sm:$0xff]  ;;  %s2077_s28 = smov 120   ;;  %s2078_s4 = smov 4  }
  0x15   : > { %s165_s24 = scalar_select %p164_p10, %s2128_s16, 1  ;;  %2010 = vset.pattern.permute.xlu0 %v2075_v1  ;;  %2011 = vset.pattern.permute.xlu1 %v2075_v1  ;;  %v225_v19 = vld [vmem:[%s3080_s1 + $0x18] sm:$0xff]  ;;  %v226_v20 = vld [vmem:[%s3080_s1 + $0x20] sm:$0xff]  ;;  %v227_v21 = vld [vmem:[%s3080_s1 + $0x28] sm:$0xff]  ;;  %v2250_v56 = vand.u32 127, %v181_v54 }
  0x16   : > { %608 = vperm.xlu0 %2010, %v231_v2   ;;  %v228_v43 = vld [vmem:[%s3080_s1 + $0x30] sm:$0xff]  ;;  %v229_v46 = vld [vmem:[%s3080_s1 + $0x38] sm:$0xff]  ;;  %v1898_v48 = vld [vmem:[%s3081_s2 + $0x20] sm:$0xff]  ;;  %s2082_s8 = smov 1   ;;  %s2083_s9 = smov 127  }
  0x17   : > { %s1957_s27 = sshll.u32 %s165_s24, 5  ;;  %v1899_v49 = vld [vmem:[%s3081_s2 + $0x28] sm:$0xff]  ;;  %v183_v59 = vadd.s32 128, %v2250_v56  ;;  %v184_v60 = vadd.s32 256, %v2250_v56  ;;  %v185_v62 = vadd.s32 384, %v2250_v56  ;;  %vm519_vm1 = vcmp.lt.s32.totalorder %v2250_v56, 8 }
  0x18   : > { %s168_s5 = scalar_lea.vmem %s3079_s0, %s1957_s27  ;;  %s2076_s27 = smov 8   ;;  %vm568_vm3 = vcmp.lt.s32.totalorder %v2250_v56, 120 }
  0x19   : > { %v171_v4 = vld [vmem:[%s168_s5 + $0x10] sm:$0xff]  ;;  %v172_v5 = vld [vmem:[%s168_s5 + $0x18] sm:$0xff]  ;;  %v169_v6 = vld [vmem:[%s168_s5] sm:$0xff]  ;;  %v2255_v1 = vand.u32 63, %v183_v59  ;;  %v2257_v2 = vand.u32 63, %v184_v60  ;;  %s161_s10 = sand.u32 1, %s2064_s13  }
  0x1a   : > { %v178_v7 = vunpack.c.h.bf16 %v171_v4  ;;  %v180_v8 = vunpack.c.h.bf16 %v172_v5  ;;  %v177_v9 = vunpack.c.l.bf16 %v171_v4  ;;  %v179_v10 = vunpack.c.l.bf16 %v172_v5  ;;  %v170_v11 = vld [vmem:[%s168_s5 + $0x8] sm:$0xff]  ;;  %603 = vperm.xlu0 %2010, %v230_v3   ;;  %s2079_s5 = smov 124   ;;  %s1873_s11 = sshll.u32 %s161_s10, 6 }
  0x1b   : > { %v174_v12 = vunpack.c.h.bf16 %v169_v6  ;;  %v176_v13 = vunpack.c.h.bf16 %v170_v11  ;;  %v173_v14 = vunpack.c.l.bf16 %v169_v6  ;;  %v175_v15 = vunpack.c.l.bf16 %v170_v11  ;;  %s3000_s17 = scalar_lea.vmem [#allocation2], %s1873_s11  ;;  %s1958_s19 = sshll.u32 %s2128_s16, 10 }
  0x1c   : > { %287 = vmatprep.subr.mxu0 %v178_v7  ;;  %400 = vmatprep.subr.mxu1 %v180_v8  ;;  %v2260_v3 = vand.u32 63, %v2250_v56  ;;  %v2263_v5 = vand.u32 63, %v185_v62  ;;  %vm191_vm2 = vcmp.ge.s32.totalorder %v2255_v1, 8  ;;  %vm192_vm4 = vcmp.ge.s32.totalorder %v2257_v2, 8  ;;  %s1807_s20 = sshll.u32 %s3000_s17, 4  ;;  %s3031_s26 = scalar_lea.hbm %s3082_s3, %s1958_s19  ;;  %s3033_s20 = int_to_ptr.vmem [resolvable:$true] %s1807_s20 }
  0x1d   : > { %288 = vmatpush1.msra.mxu0 %v177_v9  ;;  %401 = vmatpush1.msra.mxu1 %v179_v10  ;;  %vm195_vm8 = vcmp.lt.s32.totalorder %v2255_v1, 56  ;;  %vm196_vm9 = vcmp.lt.s32.totalorder %v2257_v2, 56  ;;  %s3039_s16 = scalar_lea.sflag [#allocation3], %s161_s10 }
  0x1e   : > { %289 = vmatprep.subr.mxu0 %v174_v12  ;;  %402 = vmatprep.subr.mxu1 %v176_v13  ;;  %vm190_vm5 = vcmp.ge.s32.totalorder %v2260_v3, 8  ;;  %vm193_vm6 = vcmp.ge.s32.totalorder %v2263_v5, 8  ;;  %vm194_vm7 = vcmp.lt.s32.totalorder %v2260_v3, 56  ;;  %vm197_vm10 = vcmp.lt.s32.totalorder %v2263_v5, 56 }
  0x1f   : > { %290 = vmatpush1.msra.mxu0 %v173_v14  ;;  %403 = vmatpush1.msra.mxu1 %v175_v15 }
  0x20   : > { %1876 = vmatmul.mubr.msk.f32.vlgmr.msra.gmra.mxu0 %vm234_vm0, %v222_v16  ;;  %1884 = vmatmul.mubr.msk.f32.vlgmr.msra.gmra.mxu1 %vm234_vm0, %v222_v16 }
  0x21   : > { %329 = vmatprep.mubr.f32.mxu0 %v2074_v0  ;;  %442 = vmatprep.mubr.f32.mxu1 %v2074_v0 }
  0x24   : > { %1877 = vmatmul.mubr.msk.f32.gmra.mxu0 %vm234_vm0, %v223_v17  ;;  %1885 = vmatmul.mubr.msk.f32.gmra.mxu1 %vm234_vm0, %v223_v17 }
  0x25   : > { %335 = vmatprep.mubr.f32.mxu0 %v2074_v0  ;;  %448 = vmatprep.mubr.f32.mxu1 %v2074_v0 }
  0x28   : > { %1878 = vmatmul.mubr.msk.f32.gmra.mxu0 %vm234_vm0, %v224_v18  ;;  %1886 = vmatmul.mubr.msk.f32.gmra.mxu1 %vm234_vm0, %v224_v18 }
  0x29   : > { %341 = vmatprep.mubr.f32.mxu0 %v2074_v0  ;;  %454 = vmatprep.mubr.f32.mxu1 %v2074_v0 }
  0x2c   : > { %1879 = vmatmul.mubr.msk.f32.gmra.mxu0 %vm234_vm0, %v225_v19  ;;  %1887 = vmatmul.mubr.msk.f32.gmra.mxu1 %vm234_vm0, %v225_v19 }
  0x2d   : > { %347 = vmatprep.mubr.f32.mxu0 %v2074_v0  ;;  %460 = vmatprep.mubr.f32.mxu1 %v2074_v0 }
  0x30   : > { %1880 = vmatmul.mubr.msk.f32.gmra.mxu0 %vm234_vm0, %v226_v20  ;;  %1888 = vmatmul.mubr.msk.f32.gmra.mxu1 %vm234_vm0, %v226_v20 }
  0x31   : > { %353 = vmatprep.mubr.f32.mxu0 %v2074_v0  ;;  %466 = vmatprep.mubr.f32.mxu1 %v2074_v0 }
  0x34   : > { %1881 = vmatmul.mubr.msk.f32.gmra.mxu0 %vm234_vm0, %v227_v21  ;;  %1889 = vmatmul.mubr.msk.f32.gmra.mxu1 %vm234_vm0, %v227_v21 }
  0x35   : > { %359 = vmatprep.mubr.f32.mxu0 %v2074_v0  ;;  %472 = vmatprep.mubr.f32.mxu1 %v2074_v0 }
  0x38   : > { %1882 = vmatmul.mubr.msk.f32.gmra.mxu0 %vm234_vm0, %v228_v43  ;;  %1890 = vmatmul.mubr.msk.f32.gmra.mxu1 %vm234_vm0, %v228_v43 }
  0x39   : > { %365 = vmatprep.mubr.f32.mxu0 %v2074_v0  ;;  %478 = vmatprep.mubr.f32.mxu1 %v2074_v0 }
  0x3c   : > { %1883 = vmatmul.mubr.msk.f32.gmra.mxu0 %vm234_vm0, %v229_v46  ;;  %1891 = vmatmul.mubr.msk.f32.gmra.mxu1 %vm234_vm0, %v229_v46 }
  0x3d   : > { %743 = vmatprep.mubr.f32.mxu0 %v2074_v0  ;;  %844 = vmatprep.mubr.f32.mxu1 %v2074_v0 }
  0x91   : > { %v2246_v50 = vpop.permute.xlu0 %608 }
  0x95   : > { %v2248_v51 = vpop.permute.xlu0 %603 }
  0xe0   : > { %v325_v22 = vpop.f32.mrf.mxu0  ;;  %v438_v23 = vpop.f32.mrf.mxu1 }
  0xe1   : > { %511 = vrot.lane.b32.xlu0 %v438_v23, %s2076_s27  ;;  %503 = vrot.lane.b32.xlu1 %v325_v22, %s2076_s27 }
  0xe2   : > { %v327_v24 = vpop.f32.mrf.mxu0  ;;  %v440_v25 = vpop.f32.mrf.mxu1 }
  0xe4   : > { %v331_v26 = vpop.f32.mrf.mxu0  ;;  %v444_v27 = vpop.f32.mrf.mxu1 }
  0xe5   : > { %507 = vrot.lane.b32.xlu1 %v327_v24, %s2076_s27  ;;  %505 = vrot.lane.b32.xlu0 %v331_v26, %s2076_s27 }
  0xe6   : > { %v333_v28 = vpop.f32.mrf.mxu0  ;;  %v446_v29 = vpop.f32.mrf.mxu1 }
  0xe8   : > { %v2210_v30 = vpop.f32.mrf.mxu0  ;;  %v2212_v31 = vpop.f32.mrf.mxu1 }
  0xe9   : > { %515 = vrot.lane.b32.xlu1 %v440_v25, %s2076_s27  ;;  %509 = vrot.lane.b32.xlu0 %v333_v28, %s2076_s27 }
  0xea   : > { %v2214_v32 = vpop.f32.mrf.mxu0  ;;  %v2216_v33 = vpop.f32.mrf.mxu1 }
  0xec   : > { %v2218_v34 = vpop.f32.mrf.mxu0  ;;  %v2220_v35 = vpop.f32.mrf.mxu1 }
  0xed   : > { %513 = vrot.lane.b32.xlu1 %v444_v27, %s2076_s27 }
  0xee   : > { %v2222_v36 = vpop.f32.mrf.mxu0  ;;  %v2224_v37 = vpop.f32.mrf.mxu1 }
  0xf0   : > { %v349_v38 = vpop.f32.mrf.mxu0  ;;  %v462_v39 = vpop.f32.mrf.mxu1 }
  0xf1   : > { %517 = vrot.lane.b32.xlu1 %v446_v29, %s2076_s27  ;;  %s2012_s27 = scalar_lea.vmem %s3033_s20, 1024 }
  0xf2   : > { %v351_v40 = vpop.f32.mrf.mxu0  ;;  %v464_v42 = vpop.f32.mrf.mxu1  ;;  %p2013_p11 = scmp.ne.s32.totalorder %s3033_s20, %s2012_s27 }
  0xf3   : > { %556 = vrot.lane.b32.xlu0 %v351_v40, %s2077_s28 }
  0xf4   : > { %v355_v41 = vpop.f32.mrf.mxu0  ;;  %v468_v45 = vpop.f32.mrf.mxu1  ;;  %p2014_p12 = pnand %p2013_p11, %p2145_p5 }
  0xf5   : > { %552 = vrot.lane.b32.xlu1 %v349_v38, %s2077_s28 }
  0xf6   : > { %v357_v44 = vpop.f32.mrf.mxu0  ;;  %v470_v47 = vpop.f32.mrf.mxu1  ;;  %p2015_p13 = pneg %p2014_p12 }
  0xf7   : > { %554 = vrot.lane.b32.xlu0 %v355_v41, %s2077_s28 }
  0xf9   : > { %558 = vrot.lane.b32.xlu1 %v357_v44, %s2077_s28 }
  0xfb   : > { %562 = vrot.lane.b32.xlu0 %v468_v45, %s2077_s28 }
  0xfd   : > { %566 = vrot.lane.b32.xlu1 %v470_v47, %s2077_s28 }
  0xff   : > { %564 = vrot.lane.b32.xlu0 %v464_v42, %s2077_s28 }
 0x101   : > { %560 = vrot.lane.b32.xlu1 %v462_v39, %s2077_s28  ;;  %s2084_s28 = smov [#allocation2]  }
 0x102   : > { %s2016_s29 = sshll.u32 %s2084_s28, 4  ;;  %s2017_s29 = int_to_ptr.vmem [resolvable:$false] %s2016_s29 }
 0x103   : > { %981 = vperm.xlu0 %2010, %v1898_v48   ;;  %s2018_s30 = scalar_lea.vmem %s2017_s29, 2048  ;;  %p2019_p0 = scmp.lt.s32.totalorder %s3033_s20, %s2017_s29 }
 0x104   : > { %p2020_p1 = scmp.lt.s32.totalorder %s2018_s30, %s2012_s27 }
 0x105   : > { %986 = vperm.xlu1 %2011, %v1899_v49  }
 0x106   : > { %p2021_p2 = por %p2020_p1, %p2019_p0 }
 0x108   : > { %p2022_p3 = pnand %p2021_p2, %p2015_p13 }
 0x153   : > { %v504_v52 = vpop.permute.xlu1 %503  ;;  %v512_v53 = vpop.permute.xlu0 %511 }
 0x157   : > { %v508_v55 = vpop.permute.xlu1 %507  ;;  %v506_v57 = vpop.permute.xlu0 %505 }
 0x158   : > { %v524_v8 = vsel %vm519_vm1, %v504_v52, %v508_v55  ;;  %v522_v17 = vsel %vm519_vm1, %v508_v55, %v512_v53 }
 0x159   : > { %v537_v18 = vsel %vm191_vm2, %v524_v8, 0.0  ;;  %v538_v28 = vsel %vm192_vm4, %v522_v17, 0.0 }
 0x15a   : > { %v545_v29 = vadd.f32 %v537_v18, %v2214_v32 }
 0x15b   : > { %v516_v58 = vpop.permute.xlu1 %515  ;;  %v510_v63 = vpop.permute.xlu0 %509 }
 0x15c   : > { %v526_v9 = vsel %vm519_vm1, %v516_v58, %v504_v52  ;;  %v525_v11 = vsel %vm519_vm1, %v506_v57, %v510_v63  ;;  %v520_v20 = vsel %vm519_vm1, %v512_v53, %v516_v58  ;;  %v546_v52 = vadd.f32 %v538_v28, %v2212_v31 }
 0x15d   : > { %v536_v19 = vsel %vm190_vm5, %v526_v9, 0.0  ;;  %v541_v21 = vsel %vm191_vm2, %v525_v11, 0.0 }
 0x15e   : > { %v544_v38 = vadd.f32 %v536_v19, %v2210_v30  ;;  %v549_v41 = vadd.f32 %v541_v21, %v2222_v36 }
 0x15f   : > { %v514_v61 = vpop.permute.xlu1 %513 }
 0x160   : > { %v523_v12 = vsel %vm519_vm1, %v510_v63, %v514_v61 }
 0x161   : > { %v542_v22 = vsel %vm192_vm4, %v523_v12, 0.0  ;;  %vm897_vm4 = vcmp.lt.s32.totalorder %v2250_v56, 4 }
 0x162   : > { %v550_v44 = vadd.f32 %v542_v22, %v2220_v35 }
 0x163   : > { %v518_v4 = vpop.permute.xlu1 %517 }
 0x164   : > { %v527_v7 = vsel %vm519_vm1, %v518_v4, %v506_v57  ;;  %v521_v13 = vsel %vm519_vm1, %v514_v61, %v518_v4 }
 0x165   : > { %v2265_v6 = vpop.permute.xlu0 %556  ;;  %v540_v14 = vsel %vm190_vm5, %v527_v7, 0.0  ;;  %v543_v24 = vsel %vm193_vm6, %v521_v13, 0.0  ;;  %vm198_vm5 = vcmp.ge.s32.totalorder %v2260_v3, 4 }
 0x166   : > { %v548_v25 = vadd.f32 %v540_v14, %v2218_v34  ;;  %v539_v34 = vsel %vm193_vm6, %v520_v20, 0.0  ;;  %v551_v45 = vadd.f32 %v543_v24, %v2224_v37  ;;  %vm946_vm6 = vcmp.lt.s32.totalorder %v2250_v56, 124 }
 0x167   : > { %v553_v10 = vpop.permute.xlu1 %552  ;;  %v547_v35 = vadd.f32 %v539_v34, %v2216_v33  ;;  %v1897_v34 = vld [vmem:[%s3080_s1 + $0x68] sm:$0xff] }
 0x168   : > { %v573_v15 = vsel %vm568_vm3, %v553_v10, %v2265_v6 }
 0x169   : > { %v555_v16 = vpop.permute.xlu0 %554  ;;  %v585_v26 = vsel %vm194_vm7, %v573_v15, 0.0 }
 0x16a   : > { %v593_v32 = vadd.f32 %v585_v26, %v544_v38  ;;  %v1894_v38 = vld [vmem:[%s3080_s1 + $0x50] sm:$0xff] }
 0x16b   : > { %v559_v23 = vpop.permute.xlu1 %558 }
 0x16c   : > { %v574_v27 = vsel %vm568_vm3, %v555_v16, %v559_v23  ;;  %v2342_v60 = vadd.f32 %v2248_v51, %v593_v32 }
 0x16d   : > { %v589_v39 = vsel %vm194_vm7, %v574_v27, 0.0  ;;  %v563_v40 = vpop.permute.xlu0 %562  ;;  %v1892_v27 = vld [vmem:[%s3080_s1 + $0x40] sm:$0xff]  ;;  %vm202_vm7 = vcmp.lt.s32.totalorder %v2260_v3, 60 }
 0x16e   : > { %v597_v42 = vadd.f32 %v589_v39, %v548_v25  ;;  %v572_v43 = vsel %vm568_vm3, %v559_v23, %v563_v40  ;;  %v635_v23 = vmul.f32 0.2, %v2342_v60  ;;  %v1895_v39 = vld [vmem:[%s3080_s1 + $0x58] sm:$0xff] }
 0x16f   : > { %v590_v30 = vsel %vm195_vm8, %v572_v43, 0.0  ;;  %v567_v46 = vpop.permute.xlu1 %566 }
 0x170   : > { %v2324_v47 = vadd.f32 %v2246_v50, %v597_v42  ;;  %v598_v48 = vadd.f32 %v590_v30, %v549_v41  ;;  %v570_v36 = vsel %vm568_vm3, %v563_v40, %v567_v46  ;;  %v576_v49 = vsel %vm568_vm3, %v567_v46, %v555_v16  ;;  %v1896_v40 = vld [vmem:[%s3080_s1 + $0x60] sm:$0xff]  ;;  %v2436_v41 = vpop.f32.mrf.mxu1  ;;  %v2438_v42 = vpop.f32.mrf.mxu0 }
 0x171   : > { %v591_v37 = vsel %vm196_vm9, %v570_v36, 0.0  ;;  %v592_v53 = vsel %vm197_vm10, %v576_v49, 0.0  ;;  %v565_v54 = vpop.permute.xlu0 %564 }
 0x172   : > { %v2337_v55 = vadd.f32 %v2246_v50, %v598_v48  ;;  %v599_v57 = vadd.f32 %v591_v37, %v550_v44  ;;  %v600_v58 = vadd.f32 %v592_v53, %v551_v45  ;;  %v575_v59 = vsel %vm568_vm3, %v565_v54, %v553_v10  ;;  %v2440_v43 = vpop.f32.mrf.mxu1  ;;  %v2442_v44 = vpop.f32.mrf.mxu0 }
 0x173   : > { %v588_v31 = vsel %vm197_vm10, %v575_v59, 0.0  ;;  %v561_v33 = vpop.permute.xlu1 %560  ;;  %vm631_vm11 = vcmp.gt.f32.partialorder %v2324_v47, 0.0  ;;  %v639_v61 = vmul.f32 0.2, %v2324_v47  ;;  %vm201_vm10 = vcmp.ge.s32.totalorder %v2263_v5, 4 }
 0x174   : > { %v2349_v62 = vadd.f32 %v2246_v50, %v599_v57  ;;  %v2352_v63 = vadd.f32 %v2246_v50, %v600_v58  ;;  %v596_v4 = vadd.f32 %v588_v31, %v547_v35  ;;  %v569_v7 = vsel %vm568_vm3, %v561_v33, %v565_v54  ;;  %v2444_v45 = vpop.f32.mrf.mxu1  ;;  %v2446_v32 = vpop.f32.mrf.mxu0 }
 0x175   : > { %v571_v8 = vsel %vm568_vm3, %v2265_v6, %v561_v33  ;;  %v587_v9 = vsel %vm196_vm9, %v569_v7, 0.0  ;;  %vm632_vm12 = vcmp.gt.f32.partialorder %v2337_v55, 0.0  ;;  %v640_v10 = vmul.f32 0.2, %v2337_v55 }
 0x176   : > { %v2364_v11 = vadd.f32 %v2248_v51, %v596_v4  ;;  %v586_v50 = vsel %vm195_vm8, %v571_v8, 0.0  ;;  %v595_v12 = vadd.f32 %v587_v9, %v546_v52  ;;  %v647_v13 = vsel %vm631_vm11, %v2324_v47, %v639_v61  ;;  %v2448_v30 = vpop.f32.mrf.mxu1  ;;  %v2450_v46 = vpop.f32.mrf.mxu0 }
 0x177   : > { %v594_v14 = vadd.f32 %v586_v50, %v545_v29  ;;  %v648_v15 = vsel %vm632_vm12, %v2337_v55, %v640_v10  ;;  %vm634_vm13 = vcmp.gt.f32.partialorder %v2352_v63, 0.0  ;;  %v642_v6 = vmul.f32 0.2, %v2352_v63  ;;  %v1893_v29 = vld [vmem:[%s3080_s1 + $0x48] sm:$0xff] }
 0x178   : > { %v2373_v16 = vadd.f32 %v2248_v51, %v595_v12  ;;  %707 = vmatprep.subr.mxu0 %v648_v15  ;;  %vm633_vm14 = vcmp.gt.f32.partialorder %v2349_v62, 0.0  ;;  %v641_v17 = vmul.f32 0.2, %v2349_v62  ;;  %vm630_vm15 = vcmp.gt.f32.partialorder %v2364_v11, 0.0 }
 0x179   : > { %v2379_v18 = vadd.f32 %v2248_v51, %v594_v14  ;;  %708 = vmatpush1.msra.mxu0 %v647_v13  ;;  %v650_v19 = vsel %vm634_vm13, %v2352_v63, %v642_v6  ;;  %v638_v20 = vmul.f32 0.2, %v2364_v11  ;;  %vm627_vm3 = vcmp.gt.f32.partialorder %v2342_v60, 0.0  ;;  %v1918_v6 = vld [vmem:[%s3081_s2 + $0x40] sm:$0xff] }
 0x17a   : > { %808 = vmatprep.subr.mxu1 %v650_v19  ;;  %v649_v21 = vsel %vm633_vm14, %v2349_v62, %v641_v17  ;;  %vm629_vm1 = vcmp.gt.f32.partialorder %v2373_v16, 0.0  ;;  %v637_v22 = vmul.f32 0.2, %v2373_v16  ;;  %v643_v28 = vsel %vm627_vm3, %v2342_v60, %v635_v23  ;;  %v1919_v17 = vld [vmem:[%s3081_s2 + $0x48] sm:$0xff] }
 0x17b   : > { %809 = vmatpush1.msra.mxu1 %v649_v21  ;;  %v646_v24 = vsel %vm630_vm15, %v2364_v11, %v638_v20  ;;  %vm628_vm2 = vcmp.gt.f32.partialorder %v2379_v18, 0.0  ;;  %v636_v51 = vmul.f32 0.2, %v2379_v18  ;;  %vm199_vm8 = vcmp.ge.s32.totalorder %v2255_v1, 4 }
 0x17c   : > { %810 = vmatprep.subr.mxu1 %v646_v24  ;;  %v645_v25 = vsel %vm629_vm1, %v2373_v16, %v637_v22  ;;  %vm200_vm9 = vcmp.ge.s32.totalorder %v2257_v2, 4  ;;  %vm203_vm11 = vcmp.lt.s32.totalorder %v2255_v1, 60  ;;  %vm204_vm12 = vcmp.lt.s32.totalorder %v2257_v2, 60 }
 0x17d   : > { %v644_v26 = vsel %vm628_vm2, %v2379_v18, %v636_v51  ;;  %811 = vmatpush1.msra.mxu1 %v645_v25  ;;  %vm205_vm13 = vcmp.lt.s32.totalorder %v2263_v5, 60 }
 0x17e   : > { %709 = vmatprep.subr.mxu0 %v644_v26  ;;  %1906 = vmatmul.mubr.msk.f32.vlgmr.msra.gmra.mxu1 %vm234_vm0, %v1892_v27  ;;  %v2470_v19 = vpop.permute.xlu0 %981 }
 0x17f   : > { %710 = vmatpush1.msra.mxu0 %v643_v28  ;;  %850 = vmatprep.mubr.f32.mxu1 %v2074_v0 }
 0x180   : > { %1900 = vmatmul.mubr.msk.f32.vlgmr.msra.gmra.mxu0 %vm234_vm0, %v1892_v27  ;;  %v2472_v20 = vpop.permute.xlu1 %986 }
 0x181   : > { %749 = vmatprep.mubr.f32.mxu0 %v2074_v0 }
 0x182   : > { %1907 = vmatmul.mubr.msk.f32.gmra.mxu1 %vm234_vm0, %v1893_v29 }
 0x183   : > { %856 = vmatprep.mubr.f32.mxu1 %v2074_v0 }
 0x184   : > { %1901 = vmatmul.mubr.msk.f32.gmra.mxu0 %vm234_vm0, %v1893_v29 }
 0x185   : > { %755 = vmatprep.mubr.f32.mxu0 %v2074_v0 }
 0x186   : > { %1908 = vmatmul.mubr.msk.f32.gmra.mxu1 %vm234_vm0, %v1894_v38 }
 0x187   : > { %862 = vmatprep.mubr.f32.mxu1 %v2074_v0 }
 0x188   : > { %1902 = vmatmul.mubr.msk.f32.gmra.mxu0 %vm234_vm0, %v1894_v38 }
 0x189   : > { %761 = vmatprep.mubr.f32.mxu0 %v2074_v0 }
 0x18a   : > { %1909 = vmatmul.mubr.msk.f32.gmra.mxu1 %vm234_vm0, %v1895_v39 }
 0x18b   : > { %868 = vmatprep.mubr.f32.mxu1 %v2074_v0 }
 0x18c   : > { %1903 = vmatmul.mubr.msk.f32.gmra.mxu0 %vm234_vm0, %v1895_v39 }
 0x18d   : > { %767 = vmatprep.mubr.f32.mxu0 %v2074_v0 }
 0x18e   : > { %1910 = vmatmul.mubr.msk.f32.gmra.mxu1 %vm234_vm0, %v1896_v40 }
 0x18f   : > { %874 = vmatprep.mubr.f32.mxu1 %v2074_v0 }
 0x190   : > { %1904 = vmatmul.mubr.msk.f32.gmra.mxu0 %vm234_vm0, %v1896_v40 }
 0x191   : > { %773 = vmatprep.mubr.f32.mxu0 %v2074_v0 }
 0x192   : > { %1911 = vmatmul.mubr.msk.f32.gmra.mxu1 %vm234_vm0, %v1897_v34 }
 0x193   : > { %1222 = vmatprep.mubr.f32.mxu1 %v2074_v0 }
 0x194   : > { %1905 = vmatmul.mubr.msk.f32.gmra.mxu0 %vm234_vm0, %v1897_v34 }
 0x195   : > { %1121 = vmatprep.mubr.f32.mxu0 %v2074_v0 }
 0x23e   : > { %v846_v48 = vpop.f32.mrf.mxu1 }
 0x240   : > { %v745_v36 = vpop.f32.mrf.mxu0  ;;  %v848_v49 = vpop.f32.mrf.mxu1 }
 0x241   : > { %881 = vrot.lane.b32.xlu0 %v745_v36, %s2078_s4 }
 0x242   : > { %v747_v52 = vpop.f32.mrf.mxu0  ;;  %v852_v35 = vpop.f32.mrf.mxu1 }
 0x243   : > { %885 = vrot.lane.b32.xlu1 %v747_v52, %s2078_s4 }
 0x244   : > { %v751_v37 = vpop.f32.mrf.mxu0  ;;  %v854_v53 = vpop.f32.mrf.mxu1 }
 0x245   : > { %889 = vrot.lane.b32.xlu0 %v846_v48, %s2078_s4 }
 0x246   : > { %v753_v54 = vpop.f32.mrf.mxu0  ;;  %v2452_v57 = vpop.f32.mrf.mxu1 }
 0x247   : > { %893 = vrot.lane.b32.xlu1 %v848_v49, %s2078_s4 }
 0x248   : > { %v757_v58 = vpop.f32.mrf.mxu0  ;;  %v2454_v59 = vpop.f32.mrf.mxu1 }
 0x249   : > { %887 = vrot.lane.b32.xlu0 %v753_v54, %s2078_s4 }
 0x24a   : > { %v2456_v31 = vpop.f32.mrf.mxu0  ;;  %v2458_v33 = vpop.f32.mrf.mxu1 }
 0x24b   : > { %883 = vrot.lane.b32.xlu1 %v751_v37, %s2078_s4 }
 0x24c   : > { %v763_v61 = vpop.f32.mrf.mxu0  ;;  %v2460_v4 = vpop.f32.mrf.mxu1 }
 0x24d   : > { %895 = vrot.lane.b32.xlu0 %v854_v53, %s2078_s4 }
 0x24e   : > { %v2462_v7 = vpop.f32.mrf.mxu0  ;;  %v870_v8 = vpop.f32.mrf.mxu1 }
 0x24f   : > { %891 = vrot.lane.b32.xlu1 %v852_v35, %s2078_s4  ;;  %s2080_s4 = smov 2  }
 0x250   : > { %v769_v9 = vpop.f32.mrf.mxu0  ;;  %v872_v50 = vpop.f32.mrf.mxu1 }
 0x252   : > { %v771_v10 = vpop.f32.mrf.mxu0  ;;  %v876_v14 = vpop.f32.mrf.mxu1 }
 0x253   : > { %930 = vrot.lane.b32.xlu1 %v769_v9, %s2079_s5  ;;  %934 = vrot.lane.b32.xlu0 %v771_v10, %s2079_s5 }
 0x254   : > { %v775_v12 = vpop.f32.mrf.mxu0  ;;  %v878_v15 = vpop.f32.mrf.mxu1 }
 0x256   : > { %v777_v13 = vpop.f32.mrf.mxu0 }
 0x257   : > { %932 = vrot.lane.b32.xlu0 %v775_v12, %s2079_s5  ;;  %936 = vrot.lane.b32.xlu1 %v777_v13, %s2079_s5 }
 0x25b   : > { %940 = vrot.lane.b32.xlu0 %v876_v14, %s2079_s5  ;;  %944 = vrot.lane.b32.xlu1 %v878_v15, %s2079_s5 }
 0x25f   : > { %942 = vrot.lane.b32.xlu0 %v872_v50, %s2079_s5  ;;  %938 = vrot.lane.b32.xlu1 %v870_v8, %s2079_s5  ;;  %s2081_s5 = smov 126  }
 0x263   : > { %1359 = vperm.xlu0 %2010, %v1918_v6   ;;  %1364 = vperm.xlu1 %2011, %v1919_v17  }
 0x2b3   : > { %v882_v21 = vpop.permute.xlu0 %881 }
 0x2b5   : > { %v886_v22 = vpop.permute.xlu1 %885 }
 0x2b6   : > { %v902_v53 = vsel %vm897_vm4, %v882_v21, %v886_v22 }
 0x2b7   : > { %v890_v23 = vpop.permute.xlu0 %889 }
 0x2b8   : > { %v900_v54 = vsel %vm897_vm4, %v886_v22, %v890_v23 }
 0x2b9   : > { %v894_v24 = vpop.permute.xlu1 %893  ;;  %v916_v17 = vsel %vm200_vm9, %v900_v54, 0.0 }
 0x2ba   : > { %v904_v26 = vsel %vm897_vm4, %v894_v24, %v882_v21 }
 0x2bb   : > { %v888_v51 = vpop.permute.xlu0 %887  ;;  %v914_v29 = vsel %vm198_vm5, %v904_v26, 0.0 }
 0x2bc   : > { %v922_v34 = vadd.f32 %v914_v29, %v757_v58  ;;  %v898_v58 = vsel %vm897_vm4, %v890_v23, %v894_v24 }
 0x2bd   : > { %v884_v25 = vpop.permute.xlu1 %883  ;;  %v917_v21 = vsel %vm201_vm10, %v898_v58, 0.0 }
 0x2be   : > { %v903_v48 = vsel %vm897_vm4, %v884_v25, %v888_v51 }
 0x2bf   : > { %v896_v27 = vpop.permute.xlu0 %895  ;;  %v919_v8 = vsel %vm199_vm8, %v903_v48, 0.0 }
 0x2c0   : > { %v905_v38 = vsel %vm897_vm4, %v896_v27, %v884_v25  ;;  %v927_v23 = vadd.f32 %v919_v8, %v2462_v7 }
 0x2c1   : > { %v892_v28 = vpop.permute.xlu1 %891  ;;  %v918_v49 = vsel %vm198_vm5, %v905_v38, 0.0 }
 0x2c2   : > { %v899_v52 = vsel %vm897_vm4, %v892_v28, %v896_v27  ;;  %v901_v35 = vsel %vm897_vm4, %v888_v51, %v892_v28  ;;  %v926_v12 = vadd.f32 %v918_v49, %v763_v61  ;;  %v915_v61 = vsel %vm199_vm8, %v902_v53, 0.0 }
 0x2c3   : > { %v920_v13 = vsel %vm200_vm9, %v901_v35, 0.0  ;;  %v921_v14 = vsel %vm201_vm10, %v899_v52, 0.0  ;;  %vm206_vm8 = vcmp.ge.s32.totalorder %v2260_v3, 2  ;;  %vm1324_vm9 = vcmp.lt.s32.totalorder %v2250_v56, 126 }
 0x2c4   : > { %v928_v24 = vadd.f32 %v920_v13, %v2458_v33  ;;  %v929_v51 = vadd.f32 %v921_v14, %v2460_v4  ;;  %v923_v33 = vadd.f32 %v915_v61, %v2456_v31  ;;  %vm210_vm10 = vcmp.lt.s32.totalorder %v2260_v3, 62 }
 0x2c5   : > { %v931_v39 = vpop.permute.xlu1 %930  ;;  %v935_v40 = vpop.permute.xlu0 %934 }
 0x2c6   : > { %v951_v36 = vsel %vm946_vm6, %v931_v39, %v935_v40 }
 0x2c7   : > { %v963_v37 = vsel %vm202_vm7, %v951_v36, 0.0  ;;  %v924_v36 = vadd.f32 %v916_v17, %v2452_v57 }
 0x2c8   : > { %v971_v9 = vadd.f32 %v963_v37, %v922_v34  ;;  %v925_v37 = vadd.f32 %v917_v21, %v2454_v59 }
 0x2c9   : > { %v933_v10 = vpop.permute.xlu0 %932  ;;  %v937_v50 = vpop.permute.xlu1 %936 }
 0x2ca   : > { %v952_v15 = vsel %vm946_vm6, %v933_v10, %v937_v50  ;;  %v2524_v25 = vadd.f32 %v2470_v19, %v971_v9 }
 0x2cb   : > { %v967_v6 = vsel %vm202_vm7, %v952_v15, 0.0  ;;  %vm1275_vm7 = vcmp.lt.s32.totalorder %v2250_v56, 2 }
 0x2cc   : > { %v975_v22 = vadd.f32 %v967_v6, %v926_v12  ;;  %vm1005_vm15 = vcmp.gt.f32.partialorder %v2524_v25, 0.0  ;;  %v1013_v31 = vmul.f32 0.2, %v2524_v25 }
 0x2cd   : > { %v941_v26 = vpop.permute.xlu0 %940  ;;  %v945_v27 = vpop.permute.xlu1 %944 }
 0x2ce   : > { %v2527_v28 = vadd.f32 %v2472_v20, %v975_v22  ;;  %v950_v29 = vsel %vm946_vm6, %v937_v50, %v941_v26  ;;  %v948_v38 = vsel %vm946_vm6, %v941_v26, %v945_v27  ;;  %v954_v7 = vsel %vm946_vm6, %v945_v27, %v933_v10 }
 0x2cf   : > { %v968_v4 = vsel %vm203_vm11, %v950_v29, 0.0  ;;  %v969_v34 = vsel %vm204_vm12, %v948_v38, 0.0  ;;  %v970_v48 = vsel %vm205_vm13, %v954_v7, 0.0 }
 0x2d0   : > { %v976_v49 = vadd.f32 %v968_v4, %v927_v23  ;;  %v977_v52 = vadd.f32 %v969_v34, %v928_v24  ;;  %v978_v35 = vadd.f32 %v970_v48, %v929_v51  ;;  %vm1009_vm14 = vcmp.gt.f32.partialorder %v2527_v28, 0.0  ;;  %v1912_v4 = vld [vmem:[%s3080_s1 + $0x80] sm:$0xff]  ;;  %v1913_v48 = vld [vmem:[%s3080_s1 + $0x88] sm:$0xff] }
 0x2d1   : > { %v943_v53 = vpop.permute.xlu0 %942  ;;  %v939_v54 = vpop.permute.xlu1 %938  ;;  %v1017_v12 = vmul.f32 0.2, %v2527_v28  ;;  %v1021_v34 = vsel %vm1005_vm15, %v2524_v25, %v1013_v31  ;;  %vm212_vm15 = vcmp.lt.s32.totalorder %v2257_v2, 62 }
 0x2d2   : > { %v2548_v58 = vadd.f32 %v2472_v20, %v976_v49  ;;  %v2551_v8 = vadd.f32 %v2472_v20, %v977_v52  ;;  %v2554_v57 = vadd.f32 %v2472_v20, %v978_v35  ;;  %v953_v59 = vsel %vm946_vm6, %v943_v53, %v931_v39  ;;  %v1915_v49 = vld [vmem:[%s3080_s1 + $0x98] sm:$0xff]  ;;  %v1916_v52 = vld [vmem:[%s3080_s1 + $0xa0] sm:$0xff]  ;;  %v1917_v35 = vld [vmem:[%s3080_s1 + $0xa8] sm:$0xff] }
 0x2d3   : > { %v966_v9 = vsel %vm205_vm13, %v953_v59, 0.0  ;;  %v947_v10 = vsel %vm946_vm6, %v939_v54, %v943_v53  ;;  %v949_v50 = vsel %vm946_vm6, %v935_v40, %v939_v54  ;;  %v1025_v24 = vsel %vm1009_vm14, %v2527_v28, %v1017_v12 }
 0x2d4   : > { %v974_v13 = vadd.f32 %v966_v9, %v925_v37  ;;  %v964_v14 = vsel %vm203_vm11, %v949_v50, 0.0  ;;  %v965_v20 = vsel %vm204_vm12, %v947_v10, 0.0  ;;  %vm1010_vm1 = vcmp.gt.f32.partialorder %v2548_v58, 0.0 }
 0x2d5   : > { %v972_v39 = vadd.f32 %v964_v14, %v923_v33  ;;  %v973_v15 = vadd.f32 %v965_v20, %v924_v36  ;;  %v1018_v6 = vmul.f32 0.2, %v2548_v58  ;;  %vm1012_vm2 = vcmp.gt.f32.partialorder %v2554_v57, 0.0  ;;  %v1914_v36 = vld [vmem:[%s3080_s1 + $0x90] sm:$0xff] }
 0x2d6   : > { %v2573_v61 = vadd.f32 %v2470_v19, %v974_v13  ;;  %v1020_v40 = vmul.f32 0.2, %v2554_v57  ;;  %vm1011_vm3 = vcmp.gt.f32.partialorder %v2551_v8, 0.0  ;;  %v1019_v17 = vmul.f32 0.2, %v2551_v8 }
 0x2d7   : > { %v2579_v21 = vadd.f32 %v2470_v19, %v972_v39  ;;  %v2582_v22 = vadd.f32 %v2470_v19, %v973_v15  ;;  %v1026_v23 = vsel %vm1010_vm1, %v2548_v58, %v1018_v6  ;;  %vm207_vm11 = vcmp.ge.s32.totalorder %v2255_v1, 2 }
 0x2d8   : > { %1085 = vmatprep.subr.mxu0 %v1026_v23  ;;  %v1028_v51 = vsel %vm1012_vm2, %v2554_v57, %v1020_v40  ;;  %v1027_v26 = vsel %vm1011_vm3, %v2551_v8, %v1019_v17  ;;  %vm1008_vm4 = vcmp.gt.f32.partialorder %v2573_v61, 0.0  ;;  %v1016_v27 = vmul.f32 0.2, %v2573_v61 }
 0x2d9   : > { %1186 = vmatprep.subr.mxu1 %v1028_v51  ;;  %1086 = vmatpush1.msra.mxu0 %v1025_v24  ;;  %vm1006_vm5 = vcmp.gt.f32.partialorder %v2579_v21, 0.0  ;;  %v1014_v19 = vmul.f32 0.2, %v2579_v21  ;;  %vm1007_vm6 = vcmp.gt.f32.partialorder %v2582_v22, 0.0  ;;  %v1015_v29 = vmul.f32 0.2, %v2582_v22 }
 0x2da   : > { %1187 = vmatpush1.msra.mxu1 %v1027_v26  ;;  %v1024_v38 = vsel %vm1008_vm4, %v2573_v61, %v1016_v27  ;;  %vm208_vm12 = vcmp.ge.s32.totalorder %v2257_v2, 2  ;;  %vm209_vm13 = vcmp.ge.s32.totalorder %v2263_v5, 2  ;;  %vm211_vm14 = vcmp.lt.s32.totalorder %v2255_v1, 62 }
 0x2db   : > { %v1022_v7 = vsel %vm1006_vm5, %v2579_v21, %v1014_v19  ;;  %1188 = vmatprep.subr.mxu1 %v1024_v38  ;;  %v1023_v33 = vsel %vm1007_vm6, %v2582_v22, %v1015_v29  ;;  %v233_v38 = vld [vmem:[%s3081_s2 + $0x18] sm:$0xff]  ;;  %vm213_vm1 = vcmp.lt.s32.totalorder %v2263_v5, 62 }
 0x2dc   : > { %1087 = vmatprep.subr.mxu0 %v1022_v7  ;;  %1189 = vmatpush1.msra.mxu1 %v1023_v33  ;;  %v232_v7 = vld [vmem:[%s3081_s2 + $0x10] sm:$0xff]  ;;  %v1939_v33 = vld [vmem:[%s3081_s2 + $0x68] sm:$0xff] }
 0x2dd   : > { %1088 = vmatpush1.msra.mxu0 %v1021_v34  ;;  %1926 = vmatmul.mubr.msk.f32.vlgmr.msra.gmra.mxu1 %vm234_vm0, %v1912_v4 }
 0x2de   : > { %1920 = vmatmul.mubr.msk.f32.vlgmr.msra.gmra.mxu0 %vm234_vm0, %v1912_v4  ;;  %1228 = vmatprep.mubr.f32.mxu1 %v2074_v0  ;;  %v1938_v4 = vld [vmem:[%s3081_s2 + $0x60] sm:$0xff]  ;;  %v2670_v34 = vpop.permute.xlu0 %1359 }
 0x2df   : > { %1127 = vmatprep.mubr.f32.mxu0 %v2074_v0 }
 0x2e1   : > { %1927 = vmatmul.mubr.msk.f32.gmra.mxu1 %vm234_vm0, %v1913_v48 }
 0x2e2   : > { %1921 = vmatmul.mubr.msk.f32.gmra.mxu0 %vm234_vm0, %v1913_v48  ;;  %1234 = vmatprep.mubr.f32.mxu1 %v2074_v0  ;;  %v2672_v48 = vpop.permute.xlu1 %1364 }
 0x2e3   : > { %1133 = vmatprep.mubr.f32.mxu0 %v2074_v0 }
 0x2e5   : > { %1928 = vmatmul.mubr.msk.f32.gmra.mxu1 %vm234_vm0, %v1914_v36 }
 0x2e6   : > { %1922 = vmatmul.mubr.msk.f32.gmra.mxu0 %vm234_vm0, %v1914_v36  ;;  %1240 = vmatprep.mubr.f32.mxu1 %v2074_v0 }
 0x2e7   : > { %1139 = vmatprep.mubr.f32.mxu0 %v2074_v0 }
 0x2e9   : > { %1929 = vmatmul.mubr.msk.f32.gmra.mxu1 %vm234_vm0, %v1915_v49 }
 0x2ea   : > { %1923 = vmatmul.mubr.msk.f32.gmra.mxu0 %vm234_vm0, %v1915_v49  ;;  %1246 = vmatprep.mubr.f32.mxu1 %v2074_v0 }
 0x2eb   : > { %1145 = vmatprep.mubr.f32.mxu0 %v2074_v0 }
 0x2ed   : > { %1930 = vmatmul.mubr.msk.f32.gmra.mxu1 %vm234_vm0, %v1916_v52 }
 0x2ee   : > { %1924 = vmatmul.mubr.msk.f32.gmra.mxu0 %vm234_vm0, %v1916_v52  ;;  %1252 = vmatprep.mubr.f32.mxu1 %v2074_v0 }
 0x2ef   : > { %1151 = vmatprep.mubr.f32.mxu0 %v2074_v0 }
 0x2f1   : > { %1931 = vmatmul.mubr.msk.f32.gmra.mxu1 %vm234_vm0, %v1917_v35 }
 0x2f2   : > { %1925 = vmatmul.mubr.msk.f32.gmra.mxu0 %vm234_vm0, %v1917_v35  ;;  %1600 = vmatprep.mubr.f32.mxu1 %v2074_v0 }
 0x2f3   : > { %1499 = vmatprep.mubr.f32.mxu0 %v2074_v0 }
 0x39d   : > { %v1224_v37 = vpop.f32.mrf.mxu1 }
 0x39e   : > { %v1123_v53 = vpop.f32.mrf.mxu0 }
 0x39f   : > { %1259 = vrot.lane.b32.xlu0 %v1123_v53, %s2080_s4  ;;  %v1226_v54 = vpop.f32.mrf.mxu1 }
 0x3a0   : > { %v1125_v31 = vpop.f32.mrf.mxu0 }
 0x3a1   : > { %1263 = vrot.lane.b32.xlu1 %v1125_v31, %s2080_s4  ;;  %v1230_v59 = vpop.f32.mrf.mxu1 }
 0x3a2   : > { %v1129_v9 = vpop.f32.mrf.mxu0 }
 0x3a3   : > { %1267 = vrot.lane.b32.xlu0 %v1224_v37, %s2080_s4  ;;  %v1232_v10 = vpop.f32.mrf.mxu1 }
 0x3a4   : > { %v1131_v50 = vpop.f32.mrf.mxu0 }
 0x3a5   : > { %1271 = vrot.lane.b32.xlu1 %v1226_v54, %s2080_s4  ;;  %v2644_v12 = vpop.f32.mrf.mxu1 }
 0x3a6   : > { %v1135_v13 = vpop.f32.mrf.mxu0 }
 0x3a7   : > { %1265 = vrot.lane.b32.xlu0 %v1131_v50, %s2080_s4  ;;  %v2646_v14 = vpop.f32.mrf.mxu1 }
 0x3a8   : > { %v2648_v20 = vpop.f32.mrf.mxu0 }
 0x3a9   : > { %1261 = vrot.lane.b32.xlu1 %v1129_v9, %s2080_s4  ;;  %v2650_v39 = vpop.f32.mrf.mxu1 }
 0x3aa   : > { %v2652_v15 = vpop.f32.mrf.mxu0 }
 0x3ab   : > { %1273 = vrot.lane.b32.xlu0 %v1232_v10, %s2080_s4  ;;  %v2654_v6 = vpop.f32.mrf.mxu1 }
 0x3ac   : > { %v2656_v40 = vpop.f32.mrf.mxu0 }
 0x3ad   : > { %1269 = vrot.lane.b32.xlu1 %v1230_v59, %s2080_s4  ;;  %v1248_v17 = vpop.f32.mrf.mxu1 }
 0x3ae   : > { %v1147_v23 = vpop.f32.mrf.mxu0 }
 0x3af   : > { %v1250_v51 = vpop.f32.mrf.mxu1 }
 0x3b0   : > { %v1149_v24 = vpop.f32.mrf.mxu0 }
 0x3b1   : > { %1308 = vrot.lane.b32.xlu1 %v1147_v23, %s2081_s5  ;;  %1312 = vrot.lane.b32.xlu0 %v1149_v24, %s2081_s5  ;;  %v1254_v19 = vpop.f32.mrf.mxu1 }
 0x3b2   : > { %v1153_v26 = vpop.f32.mrf.mxu0 }
 0x3b3   : > { %v1256_v29 = vpop.f32.mrf.mxu1 }
 0x3b4   : > { %v1155_v27 = vpop.f32.mrf.mxu0 }
 0x3b5   : > { %1314 = vrot.lane.b32.xlu1 %v1155_v27, %s2081_s5  ;;  %1310 = vrot.lane.b32.xlu0 %v1153_v26, %s2081_s5 }
 0x3b9   : > { %1318 = vrot.lane.b32.xlu0 %v1254_v19, %s2081_s5  ;;  %1322 = vrot.lane.b32.xlu1 %v1256_v29, %s2081_s5 }
 0x3bd   : > { %1320 = vrot.lane.b32.xlu0 %v1250_v51, %s2081_s5  ;;  %1316 = vrot.lane.b32.xlu1 %v1248_v17, %s2081_s5 }
 0x3c1   : > { %492 = vperm.xlu0 %2010, %v233_v38   ;;  %487 = vperm.xlu1 %2011, %v232_v7  }
 0x3c5   : > { %1742 = vperm.xlu0 %2010, %v1939_v33   ;;  %1737 = vperm.xlu1 %2011, %v1938_v4  }
 0x411   : > { %v1260_v36 = vpop.permute.xlu0 %1259 }
 0x413   : > { %v1264_v49 = vpop.permute.xlu1 %1263 }
 0x415   : > { %v1268_v52 = vpop.permute.xlu0 %1267 }
 0x416   : > { %v1278_v38 = vsel %vm1275_vm7, %v1264_v49, %v1268_v52 }
 0x417   : > { %v1272_v35 = vpop.permute.xlu1 %1271 }
 0x418   : > { %v1282_v54 = vsel %vm1275_vm7, %v1272_v35, %v1260_v36  ;;  %v1276_v7 = vsel %vm1275_vm7, %v1268_v52, %v1272_v35  ;;  %v1294_v35 = vsel %vm208_vm12, %v1278_v38, 0.0 }
 0x419   : > { %v1266_v37 = vpop.permute.xlu0 %1265  ;;  %v1292_v9 = vsel %vm206_vm8, %v1282_v54, 0.0 }
 0x41a   : > { %v1300_v23 = vadd.f32 %v1292_v9, %v1135_v13  ;;  %v1280_v13 = vsel %vm1275_vm7, %v1260_v36, %v1264_v49 }
 0x41b   : > { %v1262_v53 = vpop.permute.xlu1 %1261 }
 0x41c   : > { %v1281_v24 = vsel %vm1275_vm7, %v1262_v53, %v1266_v37 }
 0x41d   : > { %v1274_v31 = vpop.permute.xlu0 %1273  ;;  %v1297_v33 = vsel %vm207_vm11, %v1281_v24, 0.0 }
 0x41e   : > { %v1283_v10 = vsel %vm1275_vm7, %v1274_v31, %v1262_v53 }
 0x41f   : > { %v1270_v59 = vpop.permute.xlu1 %1269  ;;  %v1296_v26 = vsel %vm206_vm8, %v1283_v10, 0.0  ;;  %v1305_v10 = vadd.f32 %v1297_v33, %v2656_v40  ;;  %v1302_v33 = vadd.f32 %v1294_v35, %v2644_v12 }
 0x420   : > { %v1277_v27 = vsel %vm1275_vm7, %v1270_v59, %v1274_v31  ;;  %v1279_v19 = vsel %vm1275_vm7, %v1266_v37, %v1270_v59  ;;  %v1304_v54 = vadd.f32 %v1296_v26, %v2652_v15  ;;  %v1293_v15 = vsel %vm207_vm11, %v1280_v13, 0.0 }
 0x421   : > { %v1298_v36 = vsel %vm208_vm12, %v1279_v19, 0.0  ;;  %v1299_v31 = vsel %vm209_vm13, %v1277_v27, 0.0  ;;  %v1295_v59 = vsel %vm209_vm13, %v1276_v7, 0.0  ;;  %vm214_vm11 = vcmp.ge.s32.totalorder %v2260_v3, 1 }
 0x422   : > { %v1307_v24 = vadd.f32 %v1299_v31, %v2654_v6  ;;  %vm216_vm12 = vcmp.ge.s32.totalorder %v2257_v2, 1  ;;  %vm1702_vm13 = vcmp.lt.s32.totalorder %v2250_v56, 127 }
 0x423   : > { %v1313_v50 = vpop.permute.xlu0 %1312  ;;  %v1309_v17 = vpop.permute.xlu1 %1308 }
 0x424   : > { %v1329_v51 = vsel %vm1324_vm9, %v1309_v17, %v1313_v50 }
 0x425   : > { %v1341_v29 = vsel %vm210_vm10, %v1329_v51, 0.0 }
 0x426   : > { %v1349_v4 = vadd.f32 %v1341_v29, %v1300_v23  ;;  %v1306_v23 = vadd.f32 %v1298_v36, %v2650_v39  ;;  %v1301_v39 = vadd.f32 %v1293_v15, %v2648_v20  ;;  %v1303_v36 = vadd.f32 %v1295_v59, %v2646_v14 }
 0x427   : > { %v1311_v37 = vpop.permute.xlu0 %1310  ;;  %v1315_v53 = vpop.permute.xlu1 %1314 }
 0x428   : > { %v1330_v49 = vsel %vm1324_vm9, %v1311_v37, %v1315_v53  ;;  %v2725_v51 = vadd.f32 %v2670_v34, %v1349_v4 }
 0x429   : > { %v1345_v52 = vsel %vm210_vm10, %v1330_v49, 0.0  ;;  %vm215_vm10 = vcmp.ge.s32.totalorder %v2255_v1, 1 }
 0x42a   : > { %v1353_v9 = vadd.f32 %v1345_v52, %v1304_v54  ;;  %vm1383_vm3 = vcmp.gt.f32.partialorder %v2725_v51, 0.0  ;;  %v1391_v20 = vmul.f32 0.2, %v2725_v51 }
 0x42b   : > { %v1319_v26 = vpop.permute.xlu0 %1318  ;;  %v1323_v27 = vpop.permute.xlu1 %1322 }
 0x42c   : > { %v2728_v19 = vadd.f32 %v2672_v48, %v1353_v9  ;;  %v1328_v29 = vsel %vm1324_vm9, %v1315_v53, %v1319_v26  ;;  %v1326_v13 = vsel %vm1324_vm9, %v1319_v26, %v1323_v27  ;;  %v1332_v40 = vsel %vm1324_vm9, %v1323_v27, %v1311_v37 }
 0x42d   : > { %v1346_v6 = vsel %vm211_vm14, %v1328_v29, 0.0  ;;  %v1347_v38 = vsel %vm212_vm15, %v1326_v13, 0.0  ;;  %v1348_v7 = vsel %vm213_vm1, %v1332_v40, 0.0 }
 0x42e   : > { %v1354_v4 = vadd.f32 %v1346_v6, %v1305_v10  ;;  %v1355_v53 = vadd.f32 %v1347_v38, %v1306_v23  ;;  %v1356_v54 = vadd.f32 %v1348_v7, %v1307_v24  ;;  %vm1387_vm2 = vcmp.gt.f32.partialorder %v2728_v19, 0.0 }
 0x42f   : > { %v1321_v31 = vpop.permute.xlu0 %1320  ;;  %v1317_v37 = vpop.permute.xlu1 %1316  ;;  %v1395_v9 = vmul.f32 0.2, %v2728_v19 }
 0x430   : > { %v2749_v49 = vadd.f32 %v2672_v48, %v1354_v4  ;;  %v2752_v52 = vadd.f32 %v2672_v48, %v1355_v53  ;;  %v2755_v12 = vadd.f32 %v2672_v48, %v1356_v54  ;;  %v1331_v14 = vsel %vm1324_vm9, %v1321_v31, %v1309_v17 }
 0x431   : > { %v1344_v15 = vsel %vm213_vm1, %v1331_v14, 0.0  ;;  %v1325_v35 = vsel %vm1324_vm9, %v1317_v37, %v1321_v31  ;;  %v1327_v59 = vsel %vm1324_vm9, %v1313_v50, %v1317_v37  ;;  %v1403_v6 = vsel %vm1387_vm2, %v2728_v19, %v1395_v9  ;;  %v1932_v31 = vld [vmem:[%s3080_s1 + $0xc0] sm:$0xff]  ;;  %v1933_v14 = vld [vmem:[%s3080_s1 + $0xc8] sm:$0xff] }
 0x432   : > { %3086 = vst [vmem:[#allocation5_spill] sm:$0xff] %v2755_v12  ;;  %v1352_v10 = vadd.f32 %v1344_v15, %v1303_v36  ;;  %v1342_v23 = vsel %vm211_vm14, %v1327_v59, 0.0  ;;  %v1343_v48 = vsel %vm212_vm15, %v1325_v35, 0.0  ;;  %vm1388_vm4 = vcmp.gt.f32.partialorder %v2749_v49, 0.0  ;;  %v1935_v15 = vld [vmem:[%s3080_s1 + $0xd8] sm:$0xff]  ;;  %v1936_v35 = vld [vmem:[%s3080_s1 + $0xe0] sm:$0xff] }
 0x433   : > { %v1350_v17 = vadd.f32 %v1342_v23, %v1301_v39  ;;  %v1351_v24 = vadd.f32 %v1343_v48, %v1302_v33  ;;  %v1396_v26 = vmul.f32 0.2, %v2749_v49  ;;  %vm1390_vm5 = vcmp.gt.f32.partialorder %v2755_v12, 0.0  ;;  %v1937_v59 = vld [vmem:[%s3080_s1 + $0xe8] sm:$0xff] }
 0x434   : > { %v2774_v27 = vadd.f32 %v2670_v34, %v1352_v10  ;;  %v1398_v50 = vmul.f32 0.2, %v2755_v12  ;;  %vm1389_vm6 = vcmp.gt.f32.partialorder %v2752_v52, 0.0  ;;  %v1397_v29 = vmul.f32 0.2, %v2752_v52 }
 0x435   : > { %v2780_v13 = vadd.f32 %v2670_v34, %v1350_v17  ;;  %v2783_v40 = vadd.f32 %v2670_v34, %v1351_v24  ;;  %v1404_v39 = vsel %vm1388_vm4, %v2749_v49, %v1396_v26  ;;  %v1399_v37 = vsel %vm1383_vm3, %v2725_v51, %v1391_v20  ;;  %v1934_v20 = vld [vmem:[%s3080_s1 + $0xd0] sm:$0xff] }
 0x436   : > { %1463 = vmatprep.subr.mxu0 %v1404_v39  ;;  %v1406_v38 = vsel %vm1390_vm5, %v2755_v12, %v1398_v50  ;;  %v1405_v7 = vsel %vm1389_vm6, %v2752_v52, %v1397_v29  ;;  %vm1386_vm7 = vcmp.gt.f32.partialorder %v2774_v27, 0.0  ;;  %v1394_v33 = vmul.f32 0.2, %v2774_v27 }
 0x437   : > { %1564 = vmatprep.subr.mxu1 %v1406_v38  ;;  %1464 = vmatpush1.msra.mxu0 %v1403_v6  ;;  %vm1384_vm8 = vcmp.gt.f32.partialorder %v2780_v13, 0.0  ;;  %v1392_v34 = vmul.f32 0.2, %v2780_v13  ;;  %vm1385_vm9 = vcmp.gt.f32.partialorder %v2783_v40, 0.0  ;;  %v1393_v4 = vmul.f32 0.2, %v2783_v40 }
 0x438   : > { %1565 = vmatpush1.msra.mxu1 %v1405_v7  ;;  %v1402_v53 = vsel %vm1386_vm7, %v2774_v27, %v1394_v33  ;;  %vm217_vm14 = vcmp.ge.s32.totalorder %v2263_v5, 1  ;;  %vm218_vm15 = vcmp.lt.s32.totalorder %v2260_v3, 63  ;;  %vm219_vm1 = vcmp.lt.s32.totalorder %v2255_v1, 63 }
 0x439   : > { %v1400_v54 = vsel %vm1384_vm8, %v2780_v13, %v1392_v34  ;;  %1566 = vmatprep.subr.mxu1 %v1402_v53  ;;  %v1401_v36 = vsel %vm1385_vm9, %v2783_v40, %v1393_v4  ;;  %vm220_vm2 = vcmp.lt.s32.totalorder %v2257_v2, 63  ;;  %vm221_vm3 = vcmp.lt.s32.totalorder %v2263_v5, 63 }
 0x43a   : > { %1465 = vmatprep.subr.mxu0 %v1400_v54  ;;  %1567 = vmatpush1.msra.mxu1 %v1401_v36 }
 0x43b   : > { %1466 = vmatpush1.msra.mxu0 %v1399_v37  ;;  %1946 = vmatmul.mubr.msk.f32.vlgmr.msra.gmra.mxu1 %vm234_vm0, %v1932_v31 }
 0x43c   : > { %1940 = vmatmul.mubr.msk.f32.vlgmr.msra.gmra.mxu0 %vm234_vm0, %v1932_v31  ;;  %1606 = vmatprep.mubr.f32.mxu1 %v2074_v0 }
 0x43d   : > { %1505 = vmatprep.mubr.f32.mxu0 %v2074_v0 }
 0x43f   : > { %1947 = vmatmul.mubr.msk.f32.gmra.mxu1 %vm234_vm0, %v1933_v14 }
 0x440   : > { %1941 = vmatmul.mubr.msk.f32.gmra.mxu0 %vm234_vm0, %v1933_v14  ;;  %1612 = vmatprep.mubr.f32.mxu1 %v2074_v0 }
 0x441   : > { %1511 = vmatprep.mubr.f32.mxu0 %v2074_v0 }
 0x443   : > { %1948 = vmatmul.mubr.msk.f32.gmra.mxu1 %vm234_vm0, %v1934_v20 }
 0x444   : > { %1942 = vmatmul.mubr.msk.f32.gmra.mxu0 %vm234_vm0, %v1934_v20  ;;  %1618 = vmatprep.mubr.f32.mxu1 %v2074_v0 }
 0x445   : > { %1517 = vmatprep.mubr.f32.mxu0 %v2074_v0 }
 0x447   : > { %1949 = vmatmul.mubr.msk.f32.gmra.mxu1 %vm234_vm0, %v1935_v15 }
 0x448   : > { %1943 = vmatmul.mubr.msk.f32.gmra.mxu0 %vm234_vm0, %v1935_v15  ;;  %1624 = vmatprep.mubr.f32.mxu1 %v2074_v0  ;;  %v488_v15 = vpop.permute.xlu1 %487 }
 0x449   : > { %1523 = vmatprep.mubr.f32.mxu0 %v2074_v0 }
 0x44b   : > { %1950 = vmatmul.mubr.msk.f32.gmra.mxu1 %vm234_vm0, %v1936_v35 }
 0x44c   : > { %1944 = vmatmul.mubr.msk.f32.gmra.mxu0 %vm234_vm0, %v1936_v35  ;;  %1630 = vmatprep.mubr.f32.mxu1 %v2074_v0  ;;  %v493_v35 = vpop.permute.xlu0 %492 }
 0x44d   : > { %1529 = vmatprep.mubr.f32.mxu0 %v2074_v0 }
 0x44f   : > { %1951 = vmatmul.mubr.msk.f32.gmra.mxu1 %vm234_vm0, %v1937_v59 }
 0x450   : > { %1945 = vmatmul.mubr.msk.f32.gmra.mxu0 %vm234_vm0, %v1937_v59  ;;  %v2859_v59 = vpop.permute.xlu1 %1737  ;;  %vm1653_vm0 = vcmp.lt.s32.totalorder %v2250_v56, 1 }
 0x4fb   : > { %v1602_v9 = vpop.f32.mrf.mxu1 }
 0x4fc   : > { %v1501_v10 = vpop.f32.mrf.mxu0 }
 0x4fd   : > { %1637 = vrot.lane.b32.xlu1 %v1501_v10, %s2082_s8  ;;  %v1604_v23 = vpop.f32.mrf.mxu1 }
 0x4fe   : > { %v1503_v48 = vpop.f32.mrf.mxu0 }
 0x4ff   : > { %v1608_v17 = vpop.f32.mrf.mxu1 }
 0x500   : > { %v1507_v24 = vpop.f32.mrf.mxu0 }
 0x501   : > { %1639 = vrot.lane.b32.xlu0 %v1507_v24, %s2082_s8  ;;  %1645 = vrot.lane.b32.xlu1 %v1602_v9, %s2082_s8  ;;  %v1610_v26 = vpop.f32.mrf.mxu1  ;;  %v2861_v9 = vpop.permute.xlu0 %1742  ;;  %v500_v24 = vadd.f32 %v493_v35, %v2450_v46 }
 0x502   : > { %v1509_v0 = vpop.f32.mrf.mxu0 }
 0x503   : > { %v2843_v50 = vpop.f32.mrf.mxu1 }
 0x504   : > { %v2845_v29 = vpop.f32.mrf.mxu0 }
 0x505   : > { %1641 = vrot.lane.b32.xlu1 %v1503_v48, %s2082_s8  ;;  %1647 = vrot.lane.b32.xlu0 %v1608_v17, %s2082_s8  ;;  %v2847_v39 = vpop.f32.mrf.mxu1  ;;  %v499_v17 = vadd.f32 %v493_v35, %v2446_v32  ;;  %v624_v32 = vadd.f32 %v2337_v55, %v500_v24 }
 0x506   : > { %v2849_v6 = vpop.f32.mrf.mxu0 }
 0x507   : > { %v2851_v38 = vpop.f32.mrf.mxu1 }
 0x508   : > { %v2853_v7 = vpop.f32.mrf.mxu0 }
 0x509   : > { %1649 = vrot.lane.b32.xlu1 %v1604_v23, %s2082_s8  ;;  %1643 = vrot.lane.b32.xlu0 %v1509_v0, %s2082_s8  ;;  %v2855_v33 = vpop.f32.mrf.mxu1 }
 0x50a   : > { %v2857_v34 = vpop.f32.mrf.mxu0 }
 0x50b   : > { %v1626_v53 = vpop.f32.mrf.mxu1 }
 0x50c   : > { %v1525_v4 = vpop.f32.mrf.mxu0 }
 0x50d   : > { %1686 = vrot.lane.b32.xlu1 %v1525_v4, %s2083_s9  ;;  %1651 = vrot.lane.b32.xlu0 %v1610_v26, %s2082_s8  ;;  %v1628_v31 = vpop.f32.mrf.mxu1  ;;  %v495_v26 = vadd.f32 %v488_v15, %v2438_v42 }
 0x50e   : > { %v1527_v54 = vpop.f32.mrf.mxu0 }
 0x50f   : > { %v1632_v37 = vpop.f32.mrf.mxu1  ;;  %v619_v46 = vadd.f32 %v2342_v60, %v495_v26 }
 0x510   : > { %v1531_v36 = vpop.f32.mrf.mxu0 }
 0x511   : > { %1688 = vrot.lane.b32.xlu0 %v1531_v36, %s2083_s9  ;;  %1694 = vrot.lane.b32.xlu1 %v1626_v53, %s2083_s9  ;;  %v1634_v20 = vpop.f32.mrf.mxu1  ;;  %v496_v53 = vadd.f32 %v488_v15, %v2442_v44  ;;  %v501_v36 = vadd.f32 %v493_v35, %v2444_v45  ;;  %v997_v55 = vadd.f32 %v2524_v25, %v619_v46 }
 0x512   : > { %v1533_v14 = vpop.f32.mrf.mxu0 }
 0x513   : > { %v620_v12 = vadd.f32 %v2379_v18, %v496_v53 }
 0x515   : > { %1690 = vrot.lane.b32.xlu1 %v1527_v54, %s2083_s9  ;;  %1696 = vrot.lane.b32.xlu0 %v1632_v37, %s2083_s9  ;;  %v497_v54 = vadd.f32 %v488_v15, %v2436_v41  ;;  %v502_v37 = vadd.f32 %v493_v35, %v2448_v30  ;;  %v625_v41 = vadd.f32 %v2349_v62, %v501_v36 }
 0x516   : > { %v998_v18 = vadd.f32 %v2579_v21, %v620_v12 }
 0x517   : > { %v621_v44 = vadd.f32 %v2373_v16, %v497_v54  ;;  %v2890_v62 = vadd.f32 %v2551_v8, %v625_v41 }
 0x518   : > { %v1376_v35 = vadd.f32 %v2780_v13, %v998_v18 }
 0x519   : > { %1698 = vrot.lane.b32.xlu1 %v1628_v31, %s2083_s9  ;;  %1692 = vrot.lane.b32.xlu0 %v1533_v14, %s2083_s9  ;;  %v498_v31 = vadd.f32 %v488_v15, %v2440_v43  ;;  %v623_v14 = vadd.f32 %v2324_v47, %v499_v17  ;;  %v626_v43 = vadd.f32 %v2352_v63, %v502_v37 }
 0x51a   : > { %v1002_v47 = vadd.f32 %v2548_v58, %v624_v32  ;;  %v999_v16 = vadd.f32 %v2582_v22, %v621_v44  ;;  %v1375_v22 = vadd.f32 %v2725_v51, %v997_v55 }
 0x51b   : > { %v622_v45 = vadd.f32 %v2364_v11, %v498_v31  ;;  %v1001_v30 = vadd.f32 %v2527_v28, %v623_v14  ;;  %v2897_v28 = vadd.f32 %v2554_v57, %v626_v43 }
 0x51c   : > { %v2912_v57 = vadd.f32 %v2749_v49, %v1002_v47 }
 0x51d   : > { %1700 = vrot.lane.b32.xlu0 %v1634_v20, %s2083_s9  ;;  %v1000_v63 = vadd.f32 %v2573_v61, %v622_v45  ;;  %v2903_v58 = vadd.f32 %v2728_v19, %v1001_v30 }
 0x51f   : > { %v2928_v49 = vadd.f32 %v2774_v27, %v1000_v63 }
 0x56f   : > { %v1638_v10 = vpop.permute.xlu1 %1637 }
 0x573   : > { %v1640_v23 = vpop.permute.xlu0 %1639  ;;  %v1646_v48 = vpop.permute.xlu1 %1645 }
 0x577   : > { %v2866_v0 = vpop.permute.xlu0 %1647  ;;  %v1642_v4 = vpop.permute.xlu1 %1641 }
 0x578   : > { %v1658_v11 = vsel %vm1653_vm0, %v1638_v10, %v1642_v4  ;;  %v1656_v8 = vsel %vm1653_vm0, %v1642_v4, %v1646_v48 }
 0x579   : > { %v1671_v12 = vsel %vm215_vm10, %v1658_v11, 0.0  ;;  %v1672_v24 = vsel %vm216_vm12, %v1656_v8, 0.0 }
 0x57a   : > { %v1679_v13 = vadd.f32 %v1671_v12, %v2849_v6 }
 0x57b   : > { %v1644_v42 = vpop.permute.xlu0 %1643  ;;  %v1650_v20 = vpop.permute.xlu1 %1649 }
 0x57c   : > { %v1660_v25 = vsel %vm1653_vm0, %v1650_v20, %v1638_v10  ;;  %v1659_v19 = vsel %vm1653_vm0, %v1640_v23, %v1644_v42  ;;  %v2920_v10 = vadd.f32 %v2783_v40, %v999_v16  ;;  %v1657_v40 = vsel %vm1653_vm0, %v1644_v42, %v2866_v0 }
 0x57d   : > { %v1670_v17 = vsel %vm214_vm11, %v1660_v25, 0.0  ;;  %v1654_v27 = vsel %vm1653_vm0, %v1646_v48, %v1650_v20  ;;  %v1676_v37 = vsel %vm216_vm12, %v1657_v40, 0.0 }
 0x57e   : > { %v1678_v53 = vadd.f32 %v1670_v17, %v2845_v29  ;;  %v1680_v29 = vadd.f32 %v1672_v24, %v2843_v50  ;;  %v1673_v42 = vsel %vm217_vm14, %v1654_v27, 0.0 }
 0x57f   : > { %v1652_v60 = vpop.permute.xlu0 %1651  ;;  %v2885_v15 = vpop.permute.xlu1 %1686  ;;  %v1681_v11 = vadd.f32 %v1673_v42, %v2847_v39 }
 0x580   : > { %v1661_v51 = vsel %vm1653_vm0, %v1652_v60, %v1640_v23  ;;  %v1675_v23 = vsel %vm215_vm10, %v1659_v19, 0.0  ;;  %v1655_v20 = vsel %vm1653_vm0, %v2866_v0, %v1652_v60 }
 0x581   : > { %v1674_v54 = vsel %vm214_vm11, %v1661_v51, 0.0  ;;  %v1683_v46 = vadd.f32 %v1675_v23, %v2857_v34  ;;  %v1677_v3 = vsel %vm217_vm14, %v1655_v20, 0.0 }
 0x582   : > { %v1682_v44 = vadd.f32 %v1674_v54, %v2853_v7  ;;  %v1685_v56 = vadd.f32 %v1677_v3, %v2855_v33 }
 0x583   : > { %v2908_v61 = vpop.permute.xlu0 %1688  ;;  %v1695_v21 = vpop.permute.xlu1 %1694 }
 0x587   : > { %v1697_v26 = vpop.permute.xlu0 %1696  ;;  %v1691_v4 = vpop.permute.xlu1 %1690 }
 0x588   : > { %v1705_v6 = vsel %vm1702_vm13, %v1691_v4, %v1695_v21  ;;  %v1707_v36 = vsel %vm1702_vm13, %v2885_v15, %v1691_v4 }
 0x589   : > { %v1719_v31 = vsel %vm218_vm15, %v1707_v36, 0.0  ;;  %v1720_v48 = vsel %vm219_vm1, %v1705_v6, 0.0  ;;  %v1381_v36 = vadd.f32 %v2752_v52, %v2890_v62 }
 0x58a   : > { %v1727_v14 = vadd.f32 %v1719_v31, %v1678_v53  ;;  %v1728_v32 = vadd.f32 %v1720_v48, %v1679_v13 }
 0x58b   : > { %v1693_v41 = vpop.permute.xlu0 %1692  ;;  %v1699_v45 = vpop.permute.xlu1 %1698 }
 0x58c   : > { %v1745_v50 = vadd.f32 %v2859_v59, %v1727_v14  ;;  %v1746_v43 = vadd.f32 %v2859_v59, %v1728_v32  ;;  %v1706_v34 = vsel %vm1702_vm13, %v1693_v41, %v1697_v26  ;;  %v1708_v30 = vsel %vm1702_vm13, %v2908_v61, %v1693_v41 }
 0x58d   : > { %v1723_v0 = vsel %vm218_vm15, %v1708_v30, 0.0  ;;  %v1724_v7 = vsel %vm219_vm1, %v1706_v34, 0.0  ;;  %v1703_v47 = vsel %vm1702_vm13, %v1695_v21, %v1699_v45  ;;  %v1709_v55 = vsel %vm1702_vm13, %v1699_v45, %v2885_v15 }
 0x58e   : > { %v1753_v60 = vadd.f32 %v1745_v50, %v1375_v22  ;;  %v1754_v18 = vadd.f32 %v1746_v43, %v1376_v35  ;;  %v1731_v16 = vadd.f32 %v1723_v0, %v1682_v44  ;;  %v1732_v63 = vadd.f32 %v1724_v7, %v1683_v46 }
 0x58f   : > { %v1721_v1 = vsel %vm220_vm2, %v1703_v47, 0.0  ;;  %v1722_v25 = vsel %vm221_vm3, %v1709_v55, 0.0  ;;  %v1701_v8 = vpop.permute.xlu0 %1700 }
 0x590   : > { %vm1761_vm4 = vcmp.gt.f32.partialorder %v1753_v60, 0.0  ;;  %vm1762_vm5 = vcmp.gt.f32.partialorder %v1754_v18, 0.0  ;;  %v1769_v21 = vmul.f32 0.2, %v1753_v60  ;;  %v1770_v15 = vmul.f32 0.2, %v1754_v18 }
 0x591   : > { %v1749_v22 = vadd.f32 %v2861_v9, %v1731_v16  ;;  %v1750_v12 = vadd.f32 %v2861_v9, %v1732_v63  ;;  %v1729_v19 = vadd.f32 %v1721_v1, %v1680_v29  ;;  %v1730_v39 = vadd.f32 %v1722_v25, %v1681_v11 }
 0x592   : > { %v1777_v35 = vsel %vm1761_vm4, %v1753_v60, %v1769_v21  ;;  %v1778_v17 = vsel %vm1762_vm5, %v1754_v18, %v1770_v15  ;;  %v1704_v51 = vsel %vm1702_vm13, %v1697_v26, %v1701_v8  ;;  %v1710_v24 = vsel %vm1702_vm13, %v1701_v8, %v2908_v61 }
 0x593   : > { %1785 = vst [vmem:[%s3000_s17] sm:$0xff] %v1777_v35  ;;  %1786 = vst [vmem:[%s3000_s17 + $0x8] sm:$0xff] %v1778_v17  ;;  %v1757_v13 = vadd.f32 %v1749_v22, %v2903_v58  ;;  %v1758_v40 = vadd.f32 %v1750_v12, %v2912_v57  ;;  %v1747_v23 = vadd.f32 %v2859_v59, %v1729_v19  ;;  %v1725_v61 = vsel %vm220_vm2, %v1704_v51, 0.0 }
 0x594   : > { %v1748_v27 = vadd.f32 %v2859_v59, %v1730_v39  ;;  %v1684_v26 = vadd.f32 %v1676_v37, %v2851_v38  ;;  %v1726_v4 = vsel %vm221_vm3, %v1710_v24, 0.0 }
 0x595   : > { %vm1765_vm6 = vcmp.gt.f32.partialorder %v1757_v13, 0.0  ;;  %vm1766_vm7 = vcmp.gt.f32.partialorder %v1758_v40, 0.0  ;;  %v1773_v58 = vmul.f32 0.2, %v1757_v13  ;;  %v1774_v57 = vmul.f32 0.2, %v1758_v40 }
 0x596   : > { %v1755_v53 = vadd.f32 %v1747_v23, %v2920_v10  ;;  %v1756_v54 = vadd.f32 %v1748_v27, %v2928_v49  ;;  %v1733_v59 = vadd.f32 %v1725_v61, %v1684_v26  ;;  %v1734_v6 = vadd.f32 %v1726_v4, %v1685_v56  ;;  %v3087_v10 = vld [vmem:[#allocation5_spill] sm:$0xff] }
 0x597   : > { %v1781_v38 = vsel %vm1765_vm6, %v1757_v13, %v1773_v58  ;;  %v1782_v33 = vsel %vm1766_vm7, %v1758_v40, %v1774_v57  ;;  %v1382_v49 = vadd.f32 %v3087_v10, %v2897_v28 }
 0x598   : > { %1789 = vst [vmem:[%s3000_s17 + $0x20] sm:$0xff] %v1781_v38  ;;  %1790 = vst [vmem:[%s3000_s17 + $0x28] sm:$0xff] %v1782_v33  ;;  %vm1763_vm8 = vcmp.gt.f32.partialorder %v1755_v53, 0.0  ;;  %vm1764_vm9 = vcmp.gt.f32.partialorder %v1756_v54, 0.0  ;;  %v1771_v2 = vmul.f32 0.2, %v1755_v53  ;;  %v1751_v31 = vadd.f32 %v2861_v9, %v1733_v59 }
 0x599   : > { %v1772_v5 = vmul.f32 0.2, %v1756_v54  ;;  %v1752_v48 = vadd.f32 %v2861_v9, %v1734_v6 }
 0x59a   : > { %v1779_v29 = vsel %vm1763_vm8, %v1755_v53, %v1771_v2  ;;  %v1759_v14 = vadd.f32 %v1751_v31, %v1381_v36 }
 0x59b   : > { %v1780_v37 = vsel %vm1764_vm9, %v1756_v54, %v1772_v5  ;;  %1787 = vst [vmem:[%s3000_s17 + $0x10] sm:$0xff] %v1779_v29  ;;  %v1760_v32 = vadd.f32 %v1752_v48, %v1382_v49 }
 0x59c   : > { %1788 = vst [vmem:[%s3000_s17 + $0x18] sm:$0xff] %v1780_v37  ;;  %vm1767_vm0 = vcmp.gt.f32.partialorder %v1759_v14, 0.0  ;;  %v1775_v52 = vmul.f32 0.2, %v1759_v14 }
 0x59d   : > { %vm1768_vm10 = vcmp.gt.f32.partialorder %v1760_v32, 0.0  ;;  %v1776_v62 = vmul.f32 0.2, %v1760_v32 }
 0x59e   : > { %v1783_v9 = vsel %vm1767_vm0, %v1759_v14, %v1775_v52 }
 0x59f   : > { %v1784_v28 = vsel %vm1768_vm10, %v1760_v32, %v1776_v62  ;;  %1791 = vst [vmem:[%s3000_s17 + $0x30] sm:$0xff] %v1783_v9 }
 0x5a0   : > { %1792 = vst [vmem:[%s3000_s17 + $0x38] sm:$0xff] %v1784_v28 }
 0x5a1   : > { %2025 = shalt.err (!%p2022_p3)
}
 0x5a2   : > { %s2026_s4 = scalar_lea.hbm %s3031_s26, 1024  ;;  %s2030_s7 = scalar_lea.hbm %s3082_s3, 2048 }
 0x5a3   : > { %p2027_p4 = scmp.ne.s32.totalorder %s3031_s26, %s2026_s4  ;;  %p2031_p9 = scmp.lt.s32.totalorder %s3031_s26, %s3082_s3 }
 0x5a4   : > { %p2032_p10 = scmp.lt.s32.totalorder %s2030_s7, %s2026_s4 }
 0x5a5   : > { %p2028_p7 = pnand %p2027_p4, %p2145_p5 }
 0x5a6   : > { %p2033_p11 = por %p2032_p10, %p2031_p9 }
 0x5a7   : > { %p2029_p8 = pneg %p2028_p7 }
 0x5a9   : > { %p2034_p12 = pnand %p2033_p11, %p2029_p8 }
 0x5ab   : > { %2037 = shalt.err (!%p2034_p12)
}
 0x5ac   : > { %s2085_s10 = smov 512   ;;  %s2086_s11 = smov 32  }
 0x5ad   : > { %1959 = dma.vmem_to_hbm [thread:$0]  (%p2145_p5), %s3033_s20, 1024, %s3031_s26, %s3039_s16, %s2085_s10, %s2085_s10, %s2086_s11  }
 0x5ae PF: > { %p1965_p13 = scmp.ge.s32.totalorder %s2072_s15, 2  ;;  %s1822_s17 = sand.u32 1, %s2060_s12  }
 0x5af   : > { %s1823_s19 = scalar_lea.sflag [#allocation3], %s1822_s17 }
 0x5b0   : > { %p1962_p0 = pnand %p1965_p13, %p2149_p6 }
 0x5b2   : > { %p1963_p1 = pneg %p1962_p0 }
 0x5b4   : > { %2055 = dma.done.wait (%p1963_p1), %s1823_s19, 1024  }
 0x5b5   : > { %2057 = vsyncadd (%p1963_p1), %s1823_s19, 4294966272  ;;  %p13_p2 = scmp.ge.s32.totalorder %s2132_s18, 4   ;;  %s3088_s12 = smov %s2064_s13 }
 0x5b6   : > { %s3089_s13 = smov %s2068_s14  ;;  %s3090_s14 = smov %s2143_s21 }
 0x5b7   : > { %s3091_s15 = smov %s2132_s18  ;;  %15 = sbr.rel (!%p13_p2) target bundleno = 3 (0x3), region = 73 }
 0x5bc   :  { %1828 = vsyncpa [#allocation3], 1 }
 0x5bd   :  { %1830 = vsyncpa [#allocation3 + $0x1], 1 }

</bundles_post_ra>
